<compile_context>
chip_gen: v7x
topology: tpu7x:2x2x1
jax: 0.10.0
libtpu: 0.0.40
codegen_flags: <defaults>
</compile_context>

<pallas_src>
import jax
import jax.numpy as jnp
from jax.experimental import pallas as pl
from jax.experimental.pallas import tpu as pltpu


# ---------------------------------------------------------------------------
# Kernels
# ---------------------------------------------------------------------------

def _complex_linear_kernel(xr_ref, xi_ref, wr_ref, wi_ref, br_ref, bi_ref,
                           o_ref, acc_re, acc_im):
    """Tiled path. Grid = (M tiles, N tiles, K tiles); K (reduction) last."""
    k = pl.program_id(2)

    @pl.when(k == 0)
    def _():
        acc_re[...] = jnp.zeros_like(acc_re)
        acc_im[...] = jnp.zeros_like(acc_im)

    xr = xr_ref[...]
    xi = xi_ref[...]
    wr = wr_ref[...]
    wi = wi_ref[...]

    # Complex matmul: (xr + i*xi) @ (wr + i*wi), f32 accumulation on the MXU.
    acc_re[...] += (jnp.dot(xr, wr, preferred_element_type=jnp.float32)
                    - jnp.dot(xi, wi, preferred_element_type=jnp.float32))
    acc_im[...] += (jnp.dot(xi, wr, preferred_element_type=jnp.float32)
                    + jnp.dot(xr, wi, preferred_element_type=jnp.float32))

    @pl.when(k == pl.num_programs(2) - 1)
    def _():
        re = acc_re[...] + br_ref[...]          # bias kept in f32
        im = acc_im[...] + bi_ref[...]
        o_ref[0, :, :] = re.astype(o_ref.dtype)
        o_ref[1, :, :] = im.astype(o_ref.dtype)


def _complex_linear_small_kernel(xr_ref, xi_ref, wr_ref, wi_ref, br_ref, bi_ref,
                                 o_ref):
    """Small-problem fast path: whole problem in VMEM, one grid step."""
    xr = xr_ref[...]
    xi = xi_ref[...]
    wr = wr_ref[...]
    wi = wi_ref[...]
    rr = jnp.dot(xr, wr, preferred_element_type=jnp.float32)
    ii = jnp.dot(xi, wi, preferred_element_type=jnp.float32)
    ir = jnp.dot(xi, wr, preferred_element_type=jnp.float32)
    ri = jnp.dot(xr, wi, preferred_element_type=jnp.float32)
    o_ref[0, :, :] = (rr - ii + br_ref[...]).astype(o_ref.dtype)
    o_ref[1, :, :] = (ir + ri + bi_ref[...]).astype(o_ref.dtype)


# ---------------------------------------------------------------------------
# Tile / generation selection
# ---------------------------------------------------------------------------

# Per-generation tile preferences + explicit scoped-VMEM limit.
#  * v5e/v6e: 128 MiB physical VMEM -> big tiles, big tk (fewer accumulator
#    RMW steps; critical on v5e's single vst slot).  ~40 MiB double-buffered.
#  * v7x: only 64 MiB physical VMEM -> smaller tk (~23 MiB double-buffered),
#    modest scoped limit, leaving headroom.
_TILE_CONFIG = {
    "v5e": dict(tm=512, tn=512, tk=2048, vmem=64 << 20),
    "v6e": dict(tm=512, tn=512, tk=2048, vmem=64 << 20),
    "v7x": dict(tm=512, tn=512, tk=1024, vmem=40 << 20),
    "unknown": dict(tm=256, tn=256, tk=1024, vmem=None),
}


def _tpu_generation():
    try:
        kind = jax.devices()[0].device_kind.lower()
    except Exception:
        return "unknown"
    if "v5 lite" in kind or "v5e" in kind or "v5lite" in kind:
        return "v5e"
    if "v6" in kind:
        return "v6e"
    if "v7" in kind:
        return "v7x"
    return "unknown"


def _round_up(x, m):
    return ((x + m - 1) // m) * m


def _pick_tile(dim, pref, align):
    """Return (tile, padded_dim): tile is a multiple of `align`, at most
    ~pref, and padded_dim is the smallest tile-multiple >= dim (padding is
    always < one tile).  Never falls back to 'the whole dimension'."""
    pref = max(align, (pref // align) * align)
    ntiles = -(-dim // pref)                      # ceil
    tile = _round_up(-(-dim // ntiles), align)    # ceil then align
    return tile, ntiles * tile


def _pad2d(a, rows, cols):
    r, c = a.shape
    if r == rows and c == cols:
        return a
    return jnp.pad(a, ((0, rows - r), (0, cols - c)))


# ---------------------------------------------------------------------------
# Wrapper
# ---------------------------------------------------------------------------

def complex_linear_pallas(x_real, x_imag, w_re, w_im, b_re=None, b_im=None,
                          *, force_tiled=False):
    """Fused ComplexLayer(Linear) forward.

    x_real / x_imag : (N, ...) real / imaginary parts; trailing dims are
                      flattened (metadata-only) before the matmul.
    w_re / w_im     : (out_features, in_features)  (PyTorch Linear layout).
    b_re / b_im     : optional (out_features,).
    Returns (2*N, out_features): real rows then imaginary rows
    (== torch.cat([real, imag], dim=-2)).
    """
    n_lead = x_real.shape[0]
    xr = x_real.reshape(n_lead, -1)               # metadata-only flatten
    xi = x_imag.reshape(n_lead, -1)
    m, kdim = xr.shape
    nout, kdim_w = w_re.shape
    assert kdim == kdim_w, (kdim, kdim_w)

    dtype = x_real.dtype
    itemsize = jnp.dtype(dtype).itemsize
    sublane = 8 if itemsize >= 4 else 16          # bf16 blocks want 16 rows

    # Weights presented as (K, N): the lane (last) dim is the output-feature
    # dim -> lane-dense MXU operands, and (after padding N to 128) unmasked,
    # lane-dense output stores.
    wrt = w_re.T.astype(dtype)
    wit = w_im.T.astype(dtype)

    # Biases in f32 all the way to the f32 epilogue add.
    br = (jnp.zeros((nout,), jnp.float32) if b_re is None
          else b_re.astype(jnp.float32)).reshape(1, nout)
    bi = (jnp.zeros((nout,), jnp.float32) if b_im is None
          else b_im.astype(jnp.float32)).reshape(1, nout)

    # ---- path / tile selection --------------------------------------------
    m_al = _round_up(m, sublane)
    k_al = _round_up(kdim, 128)
    n_al = _round_up(nout, 128)
    # Conservative (double-buffered) VMEM estimate for the full-extent path.
    small_bytes = (2 * (2 * m_al * k_al + 2 * k_al * n_al) * itemsize
                   + 2 * (2 * m_al * n_al) * itemsize
                   + 4 * n_al * 4)
    use_small = (not force_tiled) and small_bytes <= (8 << 20)

    if use_small:
        m_pad, k_pad, n_pad = m_al, k_al, n_al
    else:
        cfg = _TILE_CONFIG.get(_tpu_generation(), _TILE_CONFIG["unknown"])
        tm, m_pad = _pick_tile(m, cfg["tm"], sublane)
        tn, n_pad = _pick_tile(nout, cfg["tn"], 128)
        tk, k_pad = _pick_tile(kdim, cfg["tk"], 128)

    # ---- zero-pad operands to the tiled extents (wrapper-side, cheap) ------
    xr_p = _pad2d(xr, m_pad, k_pad)
    xi_p = _pad2d(xi, m_pad, k_pad)
    wr_p = _pad2d(wrt, k_pad, n_pad)
    wi_p = _pad2d(wit, k_pad, n_pad)
    br_p = _pad2d(br, 1, n_pad)
    bi_p = _pad2d(bi, 1, n_pad)

    out_shape = jax.ShapeDtypeStruct((2, m_pad, n_pad), dtype)

    if use_small:
        out = pl.pallas_call(
            _complex_linear_small_kernel,
            out_shape=out_shape,
            grid=(1,),
            in_specs=[
                pl.BlockSpec((m_pad, k_pad), lambda i: (0, 0)),
                pl.BlockSpec((m_pad, k_pad), lambda i: (0, 0)),
                pl.BlockSpec((k_pad, n_pad), lambda i: (0, 0)),
                pl.BlockSpec((k_pad, n_pad), lambda i: (0, 0)),
                pl.BlockSpec((1, n_pad), lambda i: (0, 0)),
                pl.BlockSpec((1, n_pad), lambda i: (0, 0)),
            ],
            out_specs=pl.BlockSpec((2, m_pad, n_pad), lambda i: (0, 0, 0)),
            compiler_params=pltpu.CompilerParams(
                dimension_semantics=("arbitrary",)),
        )(xr_p, xi_p, wr_p, wi_p, br_p, bi_p)
    else:
        grid = (m_pad // tm, n_pad // tn, k_pad // tk)
        cp_kwargs = dict(
            dimension_semantics=("parallel", "parallel", "arbitrary"))
        if cfg["vmem"] is not None:
            cp_kwargs["vmem_limit_bytes"] = cfg["vmem"]
        out = pl.pallas_call(
            _complex_linear_kernel,
            out_shape=out_shape,
            grid_spec=pltpu.PrefetchScalarGridSpec(
                num_scalar_prefetch=0,
                grid=grid,
                in_specs=[
                    pl.BlockSpec((tm, tk), lambda i, j, k: (i, k)),   # x_real
                    pl.BlockSpec((tm, tk), lambda i, j, k: (i, k)),   # x_imag
                    pl.BlockSpec((tk, tn), lambda i, j, k: (k, j)),   # W_re^T
                    pl.BlockSpec((tk, tn), lambda i, j, k: (k, j)),   # W_im^T
                    pl.BlockSpec((1, tn), lambda i, j, k: (0, j)),    # b_re
                    pl.BlockSpec((1, tn), lambda i, j, k: (0, j)),    # b_im
                ],
                out_specs=pl.BlockSpec((2, tm, tn), lambda i, j, k: (0, i, j)),
                scratch_shapes=[
                    pltpu.VMEM((tm, tn), jnp.float32),   # real accumulator
                    pltpu.VMEM((tm, tn), jnp.float32),   # imag accumulator
                ],
            ),
            compiler_params=pltpu.CompilerParams(**cp_kwargs),
        )(xr_p, xi_p, wr_p, wi_p, br_p, bi_p)

    # Strip padding; (2, m, nout) -> (2m, nout) == torch.cat([re, im], dim=-2).
    if m_pad != m or n_pad != nout:
        out = out[:, :m, :nout]
    return out.reshape(2 * m, nout)


if __name__ == "__main__":
    key = jax.random.PRNGKey(0)
    k_xr, k_xi, k_wr, k_wi, k_br, k_bi = jax.random.split(key, 6)

    # Conv-style feature map feeding ComplexLayer(nn.Linear): batch=2,
    # channels=4, spatial=16x16 -> in_features=1024, out_features=32.
    batch, ch, hw = 2, 4, 16
    in_features = ch * hw * hw
    out_features = 32

    x_real = jax.random.normal(k_xr, (batch, ch, hw, hw), dtype=jnp.float32)
    x_imag = jax.random.normal(k_xi, (batch, ch, hw, hw), dtype=jnp.float32)

    w_scale = 1.0 / jnp.sqrt(jnp.float32(in_features))
    w_re = jax.random.normal(k_wr, (out_features, in_features), jnp.float32) * w_scale
    w_im = jax.random.normal(k_wi, (out_features, in_features), jnp.float32) * w_scale
    b_re = jax.random.normal(k_br, (out_features,), jnp.float32)
    b_im = jax.random.normal(k_bi, (out_features,), jnp.float32)

    # Plain-JAX reference (same semantics as the torch module forward).
    xr2 = x_real.reshape(batch, -1)
    xi2 = x_imag.reshape(batch, -1)
    hi = jax.lax.Precision.HIGHEST
    real_ref = (jnp.dot(xr2, w_re.T, precision=hi)
                - jnp.dot(xi2, w_im.T, precision=hi) + b_re)
    imag_ref = (jnp.dot(xi2, w_re.T, precision=hi)
                + jnp.dot(xr2, w_im.T, precision=hi) + b_im)
    ref = jnp.concatenate([real_ref, imag_ref], axis=-2)

    # 1) Small-problem fast path (single grid step, no scratch accumulators).
    out_small = jax.block_until_ready(
        complex_linear_pallas(x_real, x_imag, w_re, w_im, b_re, b_im))
    # 2) Tiled K-reduction path (what production shapes take) -- forced here
    #    at the small shape to exercise both kernels.
    out_tiled = jax.block_until_ready(
        complex_linear_pallas(x_real, x_imag, w_re, w_im, b_re, b_im,
                              force_tiled=True))

    for out in (out_small, out_tiled):
        assert out.shape == (2 * batch, out_features), out.shape
        assert out.dtype == x_real.dtype
        # Note: in-kernel jnp.dot uses default MXU f32 precision (bf16
        # multi-pass); 2e-3 tolerance covers the gap vs. the HIGHEST ref.
        assert bool(jnp.allclose(out, ref, rtol=2e-3, atol=2e-3)), (
            float(jnp.max(jnp.abs(out - ref))))

    print("KERNEL_OK")
</pallas_src>

<mosaic_0001>
module attributes {stable_mosaic.version = 11 : i64} {
  func.func @_complex_linear_small_kernel(%arg0: i32, %arg1: memref<8x1024xf32, #tpu.memory_space<vmem>>, %arg2: memref<8x1024xf32, #tpu.memory_space<vmem>>, %arg3: memref<1024x128xf32, #tpu.memory_space<vmem>>, %arg4: memref<1024x128xf32, #tpu.memory_space<vmem>>, %arg5: memref<1x128xf32, #tpu.memory_space<vmem>>, %arg6: memref<1x128xf32, #tpu.memory_space<vmem>>, %arg7: memref<2x8x128xf32, #tpu.memory_space<vmem>>) attributes {dimension_semantics = [#tpu.dimension_semantics<arbitrary>], iteration_bounds = array<i64: 1>, scalar_prefetch = 0 : i64, scratch_operands = 0 : i64, tpu.core_type = #tpu.core_type<tc>, window_params = [{pipeline_mode = #tpu.pipeline_mode<synchronous>, transform_indices = @transform_0, window_bounds = array<i64: 8, 1024>}, {pipeline_mode = #tpu.pipeline_mode<synchronous>, transform_indices = @transform_1, window_bounds = array<i64: 8, 1024>}, {pipeline_mode = #tpu.pipeline_mode<synchronous>, transform_indices = @transform_2, window_bounds = array<i64: 1024, 128>}, {pipeline_mode = #tpu.pipeline_mode<synchronous>, transform_indices = @transform_3, window_bounds = array<i64: 1024, 128>}, {pipeline_mode = #tpu.pipeline_mode<synchronous>, transform_indices = @transform_4, window_bounds = array<i64: 1, 128>}, {pipeline_mode = #tpu.pipeline_mode<synchronous>, transform_indices = @transform_5, window_bounds = array<i64: 1, 128>}, {pipeline_mode = #tpu.pipeline_mode<synchronous>, transform_indices = @transform_6, window_bounds = array<i64: 2, 8, 128>}]} {
    %c0 = arith.constant 0 : index
    %c0_0 = arith.constant 0 : index
    %0 = vector.load %arg1[%c0, %c0_0] : memref<8x1024xf32, #tpu.memory_space<vmem>>, vector<8x1024xf32>
    %c0_1 = arith.constant 0 : index
    %c0_2 = arith.constant 0 : index
    %1 = vector.load %arg2[%c0_1, %c0_2] : memref<8x1024xf32, #tpu.memory_space<vmem>>, vector<8x1024xf32>
    %c0_3 = arith.constant 0 : index
    %c0_4 = arith.constant 0 : index
    %2 = vector.load %arg3[%c0_3, %c0_4] : memref<1024x128xf32, #tpu.memory_space<vmem>>, vector<1024x128xf32>
    %c0_5 = arith.constant 0 : index
    %c0_6 = arith.constant 0 : index
    %3 = vector.load %arg4[%c0_5, %c0_6] : memref<1024x128xf32, #tpu.memory_space<vmem>>, vector<1024x128xf32>
    %cst = arith.constant dense<0.000000e+00> : vector<8x128xf32>
    %4 = tpu.matmul %0, %2, %cst {dimension_numbers = #tpu.dot_dimension_numbers<[1], [0], [0], [1], [0, 0, 1, 1], [], []>} : vector<8x1024xf32>, vector<1024x128xf32>, vector<8x128xf32> -> vector<8x128xf32>
    %cst_7 = arith.constant dense<0.000000e+00> : vector<8x128xf32>
    %5 = tpu.matmul %1, %3, %cst_7 {dimension_numbers = #tpu.dot_dimension_numbers<[1], [0], [0], [1], [0, 0, 1, 1], [], []>} : vector<8x1024xf32>, vector<1024x128xf32>, vector<8x128xf32> -> vector<8x128xf32>
    %cst_8 = arith.constant dense<0.000000e+00> : vector<8x128xf32>
    %6 = tpu.matmul %1, %2, %cst_8 {dimension_numbers = #tpu.dot_dimension_numbers<[1], [0], [0], [1], [0, 0, 1, 1], [], []>} : vector<8x1024xf32>, vector<1024x128xf32>, vector<8x128xf32> -> vector<8x128xf32>
    %cst_9 = arith.constant dense<0.000000e+00> : vector<8x128xf32>
    %7 = tpu.matmul %0, %3, %cst_9 {dimension_numbers = #tpu.dot_dimension_numbers<[1], [0], [0], [1], [0, 0, 1, 1], [], []>} : vector<8x1024xf32>, vector<1024x128xf32>, vector<8x128xf32> -> vector<8x128xf32>
    %8 = arith.subf %4, %5 : vector<8x128xf32>
    %c0_10 = arith.constant 0 : index
    %c0_11 = arith.constant 0 : index
    %9 = vector.load %arg5[%c0_10, %c0_11] : memref<1x128xf32, #tpu.memory_space<vmem>>, vector<1x128xf32>
    %10 = vector.broadcast %9 : vector<1x128xf32> to vector<8x128xf32>
    %11 = arith.addf %8, %10 : vector<8x128xf32>
    %c0_12 = arith.constant 0 : index
    %c0_13 = arith.constant 0 : index
    %c0_14 = arith.constant 0 : index
    %12 = vector.load %arg7[%c0_12, %c0_13, %c0_14] : memref<2x8x128xf32, #tpu.memory_space<vmem>>, vector<1x8x128xf32>
    %13 = vector.shape_cast %12 : vector<1x8x128xf32> to vector<8x128xf32>
    %14 = vector.shape_cast %11 : vector<8x128xf32> to vector<1x8x128xf32>
    tpu.vector_store %arg7[%c0_12, %c0_13, %c0_14], %14 {strides = array<i32>} : memref<2x8x128xf32, #tpu.memory_space<vmem>>, vector<1x8x128xf32>,
    %15 = arith.addf %6, %7 : vector<8x128xf32>
    %c0_15 = arith.constant 0 : index
    %c0_16 = arith.constant 0 : index
    %16 = vector.load %arg6[%c0_15, %c0_16] : memref<1x128xf32, #tpu.memory_space<vmem>>, vector<1x128xf32>
    %17 = vector.broadcast %16 : vector<1x128xf32> to vector<8x128xf32>
    %18 = arith.addf %15, %17 : vector<8x128xf32>
    %c1 = arith.constant 1 : index
    %c0_17 = arith.constant 0 : index
    %c0_18 = arith.constant 0 : index
    %19 = vector.load %arg7[%c1, %c0_17, %c0_18] : memref<2x8x128xf32, #tpu.memory_space<vmem>>, vector<1x8x128xf32>
    %20 = vector.shape_cast %19 : vector<1x8x128xf32> to vector<8x128xf32>
    %21 = vector.shape_cast %18 : vector<8x128xf32> to vector<1x8x128xf32>
    tpu.vector_store %arg7[%c1, %c0_17, %c0_18], %21 {strides = array<i32>} : memref<2x8x128xf32, #tpu.memory_space<vmem>>, vector<1x8x128xf32>,
    return
  }
  func.func @transform_0(%arg0: i32) -> (i32, i32) {
    %c0_i32 = arith.constant 0 : i32
    %c0_i32_0 = arith.constant 0 : i32
    %c0_i32_1 = arith.constant 0 : i32
    return %c0_i32, %c0_i32_0 : i32, i32
  }
  func.func @transform_1(%arg0: i32) -> (i32, i32) {
    %c0_i32 = arith.constant 0 : i32
    %c0_i32_0 = arith.constant 0 : i32
    %c0_i32_1 = arith.constant 0 : i32
    return %c0_i32, %c0_i32_0 : i32, i32
  }
  func.func @transform_2(%arg0: i32) -> (i32, i32) {
    %c0_i32 = arith.constant 0 : i32
    %c0_i32_0 = arith.constant 0 : i32
    %c0_i32_1 = arith.constant 0 : i32
    return %c0_i32, %c0_i32_0 : i32, i32
  }
  func.func @transform_3(%arg0: i32) -> (i32, i32) {
    %c0_i32 = arith.constant 0 : i32
    %c0_i32_0 = arith.constant 0 : i32
    %c0_i32_1 = arith.constant 0 : i32
    return %c0_i32, %c0_i32_0 : i32, i32
  }
  func.func @transform_4(%arg0: i32) -> (i32, i32) {
    %c0_i32 = arith.constant 0 : i32
    %c0_i32_0 = arith.constant 0 : i32
    %c0_i32_1 = arith.constant 0 : i32
    return %c0_i32, %c0_i32_0 : i32, i32
  }
  func.func @transform_5(%arg0: i32) -> (i32, i32) {
    %c0_i32 = arith.constant 0 : i32
    %c0_i32_0 = arith.constant 0 : i32
    %c0_i32_1 = arith.constant 0 : i32
    return %c0_i32, %c0_i32_0 : i32, i32
  }
  func.func @transform_6(%arg0: i32) -> (i32, i32, i32) {
    %c0_i32 = arith.constant 0 : i32
    %c0_i32_0 = arith.constant 0 : i32
    %c0_i32_1 = arith.constant 0 : i32
    %c0_i32_2 = arith.constant 0 : i32
    return %c0_i32, %c0_i32_0, %c0_i32_1 : i32, i32, i32
  }
}

</mosaic_0001>

<bundles_post_ra>
// kernel: tpu_custom_call.1
= control target key start
LH: loop header
LB: loop body
LE: loop exit
PB: predicated region body
PF: predicated region fallthrough
CT: control target
= control target key end

     0   :  { %11 = vsyncpa [#allocation3], 0  ;;  %s3398_s0 = inlined_call_operand.hbm [shape: f32[8,1024], index: 0, kind: input, shape index: {}]   ;;  %s3399_s1 = inlined_call_operand.hbm [shape: f32[8,1024], index: 1, kind: input, shape index: {}]   ;;  %s3400_s2 = inlined_call_operand.hbm [shape: f32[1024,128], index: 2, kind: input, shape index: {}]   ;;  %s3401_s3 = inlined_call_operand.hbm [shape: f32[1024,128], index: 3, kind: input, shape index: {}]   ;;  %s3402_s4 = inlined_call_operand.vmem [shape: f32[1,128], index: 4, kind: input, shape index: {}]   ;;  %s3403_s5 = inlined_call_operand.vmem [shape: f32[1,128], index: 5, kind: input, shape index: {}]   ;;  %s3404_s6 = inlined_call_operand.hbm [shape: f32[2,8,128], index: 6, kind: output, shape index: {}]  }
   0x1   :  { %12 = vsyncpa [#allocation6], 0 }
   0x2   :  { %13 = vsyncpa [#allocation9], 0 }
   0x3   :  { %14 = vsyncpa [#allocation4], 0  ;;  %s2705_s21 = smov [#allocation5]   ;;  %s2706_s23 = smov [#allocation2]  }
   0x4   :  { %s31_s22 = sshll.u32 %s2705_s21, 4  ;;  %s21_s24 = sshll.u32 %s2706_s23, 4  ;;  %s32_s22 = int_to_ptr.vmem [resolvable:$true] %s31_s22  ;;  %s22_s24 = int_to_ptr.vmem [resolvable:$true] %s21_s24 }
   0x5   :  { %s2587_s27 = scalar_lea.hbm %s3399_s1, 1024 }
   0x6   :  { %p2588_p0 = scmp.ne.s32.totalorder %s3399_s1, %s2587_s27  ;;  %p2591_p1 = scmp.lt.u32.totalorder %s2587_s27, %s3399_s1 }
   0x8   :  { %p2593_p2 = pnand %p2591_p1, %p2588_p0 }
   0xa   :  { %2596 = shalt.err (!%p2593_p2)
}
   0xb   :  { %s2597_s8 = scalar_lea.vmem %s32_s22, 1024  ;;  %p2602_p4 = scmp.lt.s32.totalorder %s32_s22, %s32_s22 }
   0xc   :  { %p2598_p3 = scmp.ne.s32.totalorder %s32_s22, %s2597_s8  ;;  %p2603_p5 = scmp.lt.s32.totalorder %s2597_s8, %s2597_s8 }
   0xe   :  { %p2604_p6 = por %p2603_p5, %p2602_p4 }
  0x10   :  { %p2605_p7 = pnand %p2604_p6, %p2598_p3 }
  0x12   :  { %2608 = shalt.err (!%p2605_p7)
}
  0x13   :  { %34 = dma.hbm_to_vmem [thread:$0]  %s3399_s1, 1024, %s32_s22, [#allocation6]  }
  0x14   :  { %s2609_s13 = scalar_lea.hbm %s3398_s0, 1024 }
  0x15   :  { %p2610_p8 = scmp.ne.s32.totalorder %s3398_s0, %s2609_s13  ;;  %p2613_p9 = scmp.lt.u32.totalorder %s2609_s13, %s3398_s0 }
  0x17   :  { %p2615_p10 = pnand %p2613_p9, %p2610_p8 }
  0x19   :  { %2618 = shalt.err (!%p2615_p10)
}
  0x1a   :  { %s2619_s18 = scalar_lea.vmem %s22_s24, 1024  ;;  %p2624_p12 = scmp.lt.s32.totalorder %s22_s24, %s22_s24 }
  0x1b   :  { %p2620_p11 = scmp.ne.s32.totalorder %s22_s24, %s2619_s18  ;;  %p2625_p13 = scmp.lt.s32.totalorder %s2619_s18, %s2619_s18 }
  0x1d   :  { %p2626_p0 = por %p2625_p13, %p2624_p12 }
  0x1f   :  { %p2627_p1 = pnand %p2626_p0, %p2620_p11 }
  0x21   :  { %2630 = shalt.err (!%p2627_p1)
}
  0x22   :  { %24 = dma.hbm_to_vmem [thread:$0]  %s3398_s0, 1024, %s22_s24, [#allocation3]  }
  0x23   :  { %s2707_s20 = smov [#allocation7]   ;;  %s2631_s25 = scalar_lea.hbm %s3400_s2, 16384 }
  0x24   :  { %s40_s21 = sshll.u32 %s2707_s20, 4  ;;  %p2632_p2 = scmp.ne.s32.totalorder %s3400_s2, %s2631_s25  ;;  %s41_s21 = int_to_ptr.vmem [resolvable:$true] %s40_s21 }
  0x25   :  { %p2635_p3 = scmp.lt.u32.totalorder %s2631_s25, %s3400_s2 }
  0x27   :  { %p2637_p4 = pnand %p2635_p3, %p2632_p2 }
  0x29   :  { %2640 = shalt.err (!%p2637_p4)
}
  0x2a   :  { %s2641_s30 = scalar_lea.vmem %s41_s21, 16384  ;;  %p2646_p6 = scmp.lt.s32.totalorder %s41_s21, %s41_s21 }
  0x2b   :  { %p2642_p5 = scmp.ne.s32.totalorder %s41_s21, %s2641_s30  ;;  %p2647_p7 = scmp.lt.s32.totalorder %s2641_s30, %s2641_s30 }
  0x2d   :  { %p2648_p8 = por %p2647_p7, %p2646_p6 }
  0x2f   :  { %p2649_p9 = pnand %p2648_p8, %p2642_p5 }
  0x31   :  { %2652 = shalt.err (!%p2649_p9)
}
  0x32   :  { %s2708_s0 = smov 128   ;;  %s2709_s24 = smov 8  }
  0x33   :  { %46 = dma.hbm_to_vmem [thread:$0]  %s3400_s2, 16384, %s41_s21, [#allocation6], %s2708_s0, %s2708_s0, %s2709_s24  }
  0x34   :  { %s2710_s9 = smov [#allocation8]   ;;  %s2653_s13 = scalar_lea.hbm %s3401_s3, 16384 }
  0x35   :  { %s52_s10 = sshll.u32 %s2710_s9, 4  ;;  %p2654_p10 = scmp.ne.s32.totalorder %s3401_s3, %s2653_s13  ;;  %s53_s10 = int_to_ptr.vmem [resolvable:$true] %s52_s10 }
  0x36   :  { %p2657_p11 = scmp.lt.u32.totalorder %s2653_s13, %s3401_s3 }
  0x38   :  { %p2659_p12 = pnand %p2657_p11, %p2654_p10 }
  0x3a   :  { %2662 = shalt.err (!%p2659_p12)
}
  0x3b   :  { %s2663_s18 = scalar_lea.vmem %s53_s10, 16384  ;;  %p2668_p0 = scmp.lt.s32.totalorder %s53_s10, %s53_s10 }
  0x3c   :  { %p2664_p13 = scmp.ne.s32.totalorder %s53_s10, %s2663_s18  ;;  %p2669_p1 = scmp.lt.s32.totalorder %s2663_s18, %s2663_s18 }
  0x3e   :  { %p2670_p2 = por %p2669_p1, %p2668_p0 }
  0x40   :  { %p2671_p3 = pnand %p2670_p2, %p2664_p13 }
  0x42   :  { %2674 = shalt.err (!%p2671_p3)
}
  0x43   :  { %58 = dma.hbm_to_vmem [thread:$0]  %s3401_s3, 16384, %s53_s10, [#allocation9], %s2708_s0, %s2708_s0, %s2709_s24  }
  0x44   :  { %2697 = dma.done.wait [#allocation3], 1024  }
  0x45   :  { %2698 = vsyncadd [#allocation3], 4294966272 }
  0x46   :  { %2699 = dma.done.wait [#allocation6], 17408  }
  0x47   :  { %2700 = vsyncadd [#allocation6], 4294949888 }
  0x48   :  { %2701 = dma.done.wait [#allocation9], 16384  }
  0x49   :  { %2702 = vsyncadd [#allocation9], 4294950912  ;;  %v107_v0 = vld [vmem:[#allocation7 + $0x80] sm:$0xff]  ;;  %v108_v1 = vld [vmem:[#allocation7 + $0x88] sm:$0xff]  ;;  %s2711_s21 = smov [#allocation10]  }
  0x4a   :  { %v139_v2 = vld [vmem:[#allocation7 + $0x180] sm:$0xff]  ;;  %v2801_v3 = vpack.c.bf16 %v108_v1, %v107_v0  ;;  %v140_v4 = vld [vmem:[#allocation7 + $0x188] sm:$0xff]  ;;  %v109_v11 = vld [vmem:[#allocation7 + $0x90] sm:$0xff]  ;;  %s1492_s22 = sshll.u32 %s2711_s21, 4  ;;  %s1493_s22 = int_to_ptr.vmem [resolvable:$true] %s1492_s22 }
  0x4b   :  { %v91_v5 = vld [vmem:[#allocation7] sm:$0xff]  ;;  %v92_v6 = vld [vmem:[#allocation7 + $0x8] sm:$0xff]  ;;  %v2803_v7 = vpack.c.bf16 %v140_v4, %v139_v2  ;;  %v110_v13 = vld [vmem:[#allocation7 + $0x98] sm:$0xff]  ;;  %s2675_s23 = scalar_lea.vmem %s1493_s22, 256  ;;  %p2680_p5 = scmp.lt.s32.totalorder %s1493_s22, %s1493_s22 }
  0x4c   :  { %3493 = vst [vmem:[#allocation15_spill] sm:$0xff] %v2801_v3  ;;  %v2805_v8 = vpack.c.bf16 %v92_v6, %v91_v5  ;;  %v123_v9 = vld [vmem:[#allocation7 + $0x100] sm:$0xff]  ;;  %v124_v10 = vld [vmem:[#allocation7 + $0x108] sm:$0xff]  ;;  %2069 = vmatprep.subr.bf16.mxu0 %v2801_v3  ;;  %v141_v14 = vld [vmem:[#allocation7 + $0x190] sm:$0xff]  ;;  %v2812_v16 = vpack.c.bf16 %v110_v13, %v109_v11  ;;  %p2676_p4 = scmp.ne.s32.totalorder %s1493_s22, %s2675_s23  ;;  %p2681_p6 = scmp.lt.s32.totalorder %s2675_s23, %s2675_s23 }
  0x4d   :  { %3494 = vst [vmem:[#allocation16_spill] sm:$0xff] %v2803_v7  ;;  %v2808_v12 = vpack.c.bf16 %v124_v10, %v123_v9  ;;  %v142_v15 = vld [vmem:[#allocation7 + $0x198] sm:$0xff]  ;;  %2101 = vmatprep.subr.bf16.mxu1 %v2803_v7  ;;  %v93_v18 = vld [vmem:[#allocation7 + $0x10] sm:$0xff]  ;;  %v111_v23 = vld [vmem:[#allocation7 + $0xa0] sm:$0xff] }
  0x4e   :  { %3495 = vst [vmem:[#allocation17_spill] sm:$0xff] %v2805_v8  ;;  %2071 = vmatpush3.bf16.msra.mxu0 %v2805_v8  ;;  %3497 = vst [vmem:[#allocation19_spill] sm:$0xff] %v2812_v16  ;;  %v2814_v17 = vpack.c.bf16 %v142_v15, %v141_v14  ;;  %v94_v19 = vld [vmem:[#allocation7 + $0x18] sm:$0xff]  ;;  %v125_v20 = vld [vmem:[#allocation7 + $0x110] sm:$0xff]  ;;  %p2682_p7 = por %p2681_p6, %p2680_p5 }
  0x4f   :  { %3496 = vst [vmem:[#allocation18_spill] sm:$0xff] %v2808_v12  ;;  %2103 = vmatpush3.bf16.msra.mxu1 %v2808_v12  ;;  %v2817_v21 = vpack.c.bf16 %v94_v19, %v93_v18  ;;  %v126_v22 = vld [vmem:[#allocation7 + $0x118] sm:$0xff]  ;;  %v112_v24 = vld [vmem:[#allocation7 + $0xa8] sm:$0xff]  ;;  %2073 = vmatprep.subr.bf16.mxu0 %v2812_v16  ;;  %v143_v27 = vld [vmem:[#allocation7 + $0x1a0] sm:$0xff] }
  0x50   :  { %3498 = vst [vmem:[#allocation20_spill] sm:$0xff] %v2814_v17  ;;  %2105 = vmatprep.subr.bf16.mxu1 %v2814_v17  ;;  %v2821_v25 = vpack.c.bf16 %v126_v22, %v125_v20  ;;  %v2823_v26 = vpack.c.bf16 %v112_v24, %v111_v23  ;;  %v144_v28 = vld [vmem:[#allocation7 + $0x1a8] sm:$0xff]  ;;  %v95_v29 = vld [vmem:[#allocation7 + $0x20] sm:$0xff]  ;;  %v113_v35 = vld [vmem:[#allocation7 + $0xb0] sm:$0xff]  ;;  %p2683_p8 = pnand %p2682_p7, %p2676_p4 }
  0x51   :  { %3499 = vst [vmem:[#allocation21_spill] sm:$0xff] %v2817_v21  ;;  %v2825_v30 = vpack.c.bf16 %v144_v28, %v143_v27  ;;  %v96_v31 = vld [vmem:[#allocation7 + $0x28] sm:$0xff]  ;;  %v127_v32 = vld [vmem:[#allocation7 + $0x120] sm:$0xff]  ;;  %v114_v36 = vld [vmem:[#allocation7 + $0xb8] sm:$0xff] }
  0x52   :  { %3500 = vst [vmem:[#allocation22_spill] sm:$0xff] %v2821_v25  ;;  %3501 = vst [vmem:[#allocation23_spill] sm:$0xff] %v2823_v26  ;;  %v128_v33 = vld [vmem:[#allocation7 + $0x128] sm:$0xff]  ;;  %2075 = vmatpush3.bf16.msra.mxu0 %v2817_v21  ;;  %v2828_v34 = vpack.c.bf16 %v96_v31, %v95_v29  ;;  %v145_v37 = vld [vmem:[#allocation7 + $0x1b0] sm:$0xff]  ;;  %v2834_v39 = vpack.c.bf16 %v114_v36, %v113_v35 }
  0x53   :  { %3502 = vst [vmem:[#allocation24_spill] sm:$0xff] %v2825_v30  ;;  %2107 = vmatpush3.bf16.msra.mxu1 %v2821_v25  ;;  %2077 = vmatprep.subr.bf16.mxu0 %v2823_v26  ;;  %v2832_v38 = vpack.c.bf16 %v128_v33, %v127_v32  ;;  %v146_v40 = vld [vmem:[#allocation7 + $0x1b8] sm:$0xff]  ;;  %v97_v41 = vld [vmem:[#allocation7 + $0x30] sm:$0xff]  ;;  %v115_v46 = vld [vmem:[#allocation7 + $0xc0] sm:$0xff] }
  0x54   :  { %3503 = vst [vmem:[#allocation25_spill] sm:$0xff] %v2828_v34  ;;  %3505 = vst [vmem:[#allocation27_spill] sm:$0xff] %v2834_v39  ;;  %v98_v42 = vld [vmem:[#allocation7 + $0x38] sm:$0xff]  ;;  %2109 = vmatprep.subr.bf16.mxu1 %v2825_v30  ;;  %v2837_v43 = vpack.c.bf16 %v146_v40, %v145_v37  ;;  %v129_v44 = vld [vmem:[#allocation7 + $0x130] sm:$0xff] }
  0x55   :  { %3504 = vst [vmem:[#allocation26_spill] sm:$0xff] %v2832_v38  ;;  %v130_v45 = vld [vmem:[#allocation7 + $0x138] sm:$0xff]  ;;  %v116_v47 = vld [vmem:[#allocation7 + $0xc8] sm:$0xff]  ;;  %v147_v48 = vld [vmem:[#allocation7 + $0x1c0] sm:$0xff]  ;;  %v2840_v50 = vpack.c.bf16 %v98_v42, %v97_v41 }
  0x56   :  { %3506 = vst [vmem:[#allocation28_spill] sm:$0xff] %v2837_v43  ;;  %v148_v49 = vld [vmem:[#allocation7 + $0x1c8] sm:$0xff]  ;;  %2079 = vmatpush3.bf16.msra.mxu0 %v2828_v34  ;;  %v2844_v51 = vpack.c.bf16 %v130_v45, %v129_v44  ;;  %v2846_v52 = vpack.c.bf16 %v116_v47, %v115_v46  ;;  %v99_v53 = vld [vmem:[#allocation7 + $0x40] sm:$0xff]  ;;  %v117_v58 = vld [vmem:[#allocation7 + $0xd0] sm:$0xff] }
  0x57   :  { %3507 = vst [vmem:[#allocation29_spill] sm:$0xff] %v2840_v50  ;;  %2111 = vmatpush3.bf16.msra.mxu1 %v2832_v38  ;;  %2081 = vmatprep.subr.bf16.mxu0 %v2834_v39  ;;  %v100_v54 = vld [vmem:[#allocation7 + $0x48] sm:$0xff]  ;;  %v131_v55 = vld [vmem:[#allocation7 + $0x140] sm:$0xff]  ;;  %v2849_v56 = vpack.c.bf16 %v148_v49, %v147_v48  ;;  %v118_v59 = vld [vmem:[#allocation7 + $0xd8] sm:$0xff] }
  0x58   :  { %3508 = vst [vmem:[#allocation30_spill] sm:$0xff] %v2844_v51  ;;  %3509 = vst [vmem:[#allocation31_spill] sm:$0xff] %v2846_v52  ;;  %2113 = vmatprep.subr.bf16.mxu1 %v2837_v43  ;;  %v132_v57 = vld [vmem:[#allocation7 + $0x148] sm:$0xff]  ;;  %v149_v60 = vld [vmem:[#allocation7 + $0x1d0] sm:$0xff]  ;;  %v2852_v62 = vpack.c.bf16 %v100_v54, %v99_v53  ;;  %v2858_v0 = vpack.c.bf16 %v118_v59, %v117_v58 }
  0x59   :  { %3510 = vst [vmem:[#allocation32_spill] sm:$0xff] %v2849_v56  ;;  %v150_v61 = vld [vmem:[#allocation7 + $0x1d8] sm:$0xff]  ;;  %v2856_v63 = vpack.c.bf16 %v132_v57, %v131_v55  ;;  %v101_v1 = vld [vmem:[#allocation7 + $0x50] sm:$0xff]  ;;  %v119_v9 = vld [vmem:[#allocation7 + $0xe0] sm:$0xff] }
  0x5a   :  { %2083 = vmatpush3.bf16.msra.mxu0 %v2840_v50  ;;  %3511 = vst [vmem:[#allocation33_spill] sm:$0xff] %v2852_v62  ;;  %3513 = vst [vmem:[#allocation35_spill] sm:$0xff] %v2858_v0  ;;  %v102_v2 = vld [vmem:[#allocation7 + $0x58] sm:$0xff]  ;;  %v133_v4 = vld [vmem:[#allocation7 + $0x150] sm:$0xff]  ;;  %v2861_v5 = vpack.c.bf16 %v150_v61, %v149_v60 }
  0x5b   :  { %2115 = vmatpush3.bf16.msra.mxu1 %v2844_v51  ;;  %2085 = vmatprep.subr.bf16.mxu0 %v2846_v52  ;;  %3512 = vst [vmem:[#allocation34_spill] sm:$0xff] %v2856_v63  ;;  %v134_v6 = vld [vmem:[#allocation7 + $0x158] sm:$0xff]  ;;  %v120_v10 = vld [vmem:[#allocation7 + $0xe8] sm:$0xff]  ;;  %v151_v11 = vld [vmem:[#allocation7 + $0x1e0] sm:$0xff]  ;;  %v2864_v14 = vpack.c.bf16 %v102_v2, %v101_v1 }
  0x5c   :  { %2117 = vmatprep.subr.bf16.mxu1 %v2849_v56  ;;  %3514 = vst [vmem:[#allocation36_spill] sm:$0xff] %v2861_v5  ;;  %v152_v13 = vld [vmem:[#allocation7 + $0x1e8] sm:$0xff]  ;;  %v103_v15 = vld [vmem:[#allocation7 + $0x60] sm:$0xff]  ;;  %v2868_v19 = vpack.c.bf16 %v134_v6, %v133_v4  ;;  %v2870_v20 = vpack.c.bf16 %v120_v10, %v119_v9  ;;  %v2874_v24 = vld [vmem:[#allocation2 + $0x18] sm:$0xff] }
  0x5d   :  { %3515 = vst [vmem:[#allocation37_spill] sm:$0xff] %v2864_v14  ;;  %v104_v18 = vld [vmem:[#allocation7 + $0x68] sm:$0xff]  ;;  %v135_v22 = vld [vmem:[#allocation7 + $0x160] sm:$0xff]  ;;  %v2877_v27 = vpack.c.bf16 %v152_v13, %v151_v11  ;;  %v121_v29 = vld [vmem:[#allocation7 + $0xf0] sm:$0xff]  ;;  %481 = vmatprep.mubr.f32.mxu1 %v2874_v24 }
  0x5e   :  { %2087 = vmatpush3.bf16.msra.mxu0 %v2852_v62  ;;  %3516 = vst [vmem:[#allocation38_spill] sm:$0xff] %v2868_v19  ;;  %3517 = vst [vmem:[#allocation39_spill] sm:$0xff] %v2870_v20  ;;  %v2872_v23 = vld [vmem:[#allocation2 + $0x8] sm:$0xff]  ;;  %v122_v31 = vld [vmem:[#allocation7 + $0xf8] sm:$0xff]  ;;  %v2882_v35 = vpack.c.bf16 %v104_v18, %v103_v15 }
  0x5f   :  { %2119 = vmatpush3.bf16.msra.mxu1 %v2856_v63  ;;  %2089 = vmatprep.subr.bf16.mxu0 %v2858_v0  ;;  %3518 = vst [vmem:[#allocation40_spill] sm:$0xff] %v2877_v27  ;;  %v136_v28 = vld [vmem:[#allocation7 + $0x168] sm:$0xff]  ;;  %v153_v32 = vld [vmem:[#allocation7 + $0x1f0] sm:$0xff]  ;;  %v154_v33 = vld [vmem:[#allocation7 + $0x1f8] sm:$0xff]  ;;  %v2888_v37 = vpack.c.bf16 %v122_v31, %v121_v29 }
  0x60   :  { %2121 = vmatprep.subr.bf16.mxu1 %v2861_v5  ;;  %411 = vmatprep.mubr.f32.mxu0 %v2872_v23  ;;  %3519 = vst [vmem:[#allocation41_spill] sm:$0xff] %v2882_v35  ;;  %v2886_v36 = vpack.c.bf16 %v136_v28, %v135_v22  ;;  %v105_v40 = vld [vmem:[#allocation7 + $0x70] sm:$0xff]  ;;  %v106_v41 = vld [vmem:[#allocation7 + $0x78] sm:$0xff]  ;;  %v2891_v44 = vpack.c.bf16 %v154_v33, %v153_v32  ;;  %v171_v46 = vld [vmem:[#allocation7 + $0x280] sm:$0xff] }
  0x61   :  { %3521 = vst [vmem:[#allocation43_spill] sm:$0xff] %v2888_v37  ;;  %v137_v42 = vld [vmem:[#allocation7 + $0x170] sm:$0xff]  ;;  %v138_v45 = vld [vmem:[#allocation7 + $0x178] sm:$0xff]  ;;  %v172_v47 = vld [vmem:[#allocation7 + $0x288] sm:$0xff]  ;;  %v2894_v53 = vpack.c.bf16 %v106_v41, %v105_v40 }
  0x62   :  { %2091 = vmatpush3.bf16.msra.mxu0 %v2864_v14  ;;  %3520 = vst [vmem:[#allocation42_spill] sm:$0xff] %v2886_v36  ;;  %3522 = vst [vmem:[#allocation44_spill] sm:$0xff] %v2891_v44  ;;  %v203_v48 = vld [vmem:[#allocation7 + $0x380] sm:$0xff]  ;;  %v204_v49 = vld [vmem:[#allocation7 + $0x388] sm:$0xff]  ;;  %v2898_v54 = vpack.c.bf16 %v138_v45, %v137_v42  ;;  %v2900_v55 = vpack.c.bf16 %v172_v47, %v171_v46 }
  0x63   :  { %2123 = vmatpush3.bf16.msra.mxu1 %v2868_v19  ;;  %2093 = vmatprep.subr.bf16.mxu0 %v2870_v20  ;;  %3523 = vst [vmem:[#allocation45_spill] sm:$0xff] %v2894_v53  ;;  %v155_v57 = vld [vmem:[#allocation7 + $0x200] sm:$0xff]  ;;  %v156_v58 = vld [vmem:[#allocation7 + $0x208] sm:$0xff]  ;;  %v2903_v60 = vpack.c.bf16 %v204_v49, %v203_v48  ;;  %v173_v1 = vld [vmem:[#allocation7 + $0x290] sm:$0xff] }
  0x64   :  { %2125 = vmatprep.subr.bf16.mxu1 %v2877_v27  ;;  %3524 = vst [vmem:[#allocation46_spill] sm:$0xff] %v2898_v54  ;;  %3525 = vst [vmem:[#allocation47_spill] sm:$0xff] %v2900_v55  ;;  %v187_v59 = vld [vmem:[#allocation7 + $0x300] sm:$0xff]  ;;  %v188_v61 = vld [vmem:[#allocation7 + $0x308] sm:$0xff]  ;;  %v2910_v11 = vpack.c.bf16 %v156_v58, %v155_v57 }
  0x65   :  { %3526 = vst [vmem:[#allocation48_spill] sm:$0xff] %v2903_v60  ;;  %v174_v2 = vld [vmem:[#allocation7 + $0x298] sm:$0xff]  ;;  %v205_v4 = vld [vmem:[#allocation7 + $0x390] sm:$0xff]  ;;  %v2906_v9 = vld [vmem:[#allocation2] sm:$0xff]  ;;  %v2914_v13 = vpack.c.bf16 %v188_v61, %v187_v59 }
  0x66   :  { %2095 = vmatpush3.bf16.msra.mxu0 %v2882_v35  ;;  %v206_v6 = vld [vmem:[#allocation7 + $0x398] sm:$0xff]  ;;  %v2908_v10 = vld [vmem:[#allocation2 + $0x10] sm:$0xff]  ;;  %3527 = vst [vmem:[#allocation49_spill] sm:$0xff] %v2910_v11  ;;  %v2916_v15 = vpack.c.bf16 %v174_v2, %v173_v1  ;;  %v175_v32 = vld [vmem:[#allocation7 + $0x2a0] sm:$0xff] }
  0x67   :  { %2127 = vmatpush3.bf16.msra.mxu1 %v2886_v36  ;;  %2097 = vmatprep.subr.bf16.mxu0 %v2888_v37  ;;  %3528 = vst [vmem:[#allocation50_spill] sm:$0xff] %v2914_v13  ;;  %v157_v18 = vld [vmem:[#allocation7 + $0x210] sm:$0xff]  ;;  %v158_v22 = vld [vmem:[#allocation7 + $0x218] sm:$0xff]  ;;  %v2919_v29 = vpack.c.bf16 %v206_v6, %v205_v4  ;;  %v176_v33 = vld [vmem:[#allocation7 + $0x2a8] sm:$0xff] }
  0x68   :  { %2129 = vmatprep.subr.bf16.mxu1 %v2891_v44  ;;  %3529 = vst [vmem:[#allocation51_spill] sm:$0xff] %v2916_v15  ;;  %v189_v28 = vld [vmem:[#allocation7 + $0x310] sm:$0xff]  ;;  %v190_v31 = vld [vmem:[#allocation7 + $0x318] sm:$0xff]  ;;  %v207_v40 = vld [vmem:[#allocation7 + $0x3a0] sm:$0xff]  ;;  %v2924_v42 = vpack.c.bf16 %v158_v22, %v157_v18  ;;  %v2930_v46 = vpack.c.bf16 %v176_v33, %v175_v32 }
  0x69   :  { %3530 = vst [vmem:[#allocation52_spill] sm:$0xff] %v2919_v29  ;;  %v208_v41 = vld [vmem:[#allocation7 + $0x3a8] sm:$0xff]  ;;  %v2928_v45 = vpack.c.bf16 %v190_v31, %v189_v28  ;;  %v159_v47 = vld [vmem:[#allocation7 + $0x220] sm:$0xff]  ;;  %v177_v59 = vld [vmem:[#allocation7 + $0x2b0] sm:$0xff] }
  0x6a   :  { %2099 = vmatpush3.bf16.msra.mxu0 %v2894_v53  ;;  %3531 = vst [vmem:[#allocation53_spill] sm:$0xff] %v2924_v42  ;;  %3533 = vst [vmem:[#allocation55_spill] sm:$0xff] %v2930_v46  ;;  %v160_v48 = vld [vmem:[#allocation7 + $0x228] sm:$0xff]  ;;  %v191_v49 = vld [vmem:[#allocation7 + $0x320] sm:$0xff]  ;;  %v2933_v57 = vpack.c.bf16 %v208_v41, %v207_v40 }
  0x6b   :  { %2131 = vmatpush3.bf16.msra.mxu1 %v2898_v54  ;;  %2133 = vmatprep.subr.bf16.mxu0 %v2900_v55  ;;  %3532 = vst [vmem:[#allocation54_spill] sm:$0xff] %v2928_v45  ;;  %v192_v58 = vld [vmem:[#allocation7 + $0x328] sm:$0xff]  ;;  %v178_v61 = vld [vmem:[#allocation7 + $0x2b8] sm:$0xff]  ;;  %v209_v1 = vld [vmem:[#allocation7 + $0x3b0] sm:$0xff]  ;;  %v2936_v4 = vpack.c.bf16 %v160_v48, %v159_v47 }
  0x6c   :  { %2165 = vmatprep.subr.bf16.mxu1 %v2903_v60  ;;  %3534 = vst [vmem:[#allocation56_spill] sm:$0xff] %v2933_v57  ;;  %v210_v2 = vld [vmem:[#allocation7 + $0x3b8] sm:$0xff]  ;;  %v2940_v6 = vpack.c.bf16 %v192_v58, %v191_v49  ;;  %v2942_v18 = vpack.c.bf16 %v178_v61, %v177_v59  ;;  %v161_v22 = vld [vmem:[#allocation7 + $0x230] sm:$0xff]  ;;  %v179_v40 = vld [vmem:[#allocation7 + $0x2c0] sm:$0xff] }
  0x6d   :  { %412 = vmatmul.mubr.f32.vlgmr.msra.gmra.mrb[0].mxu0 %v2906_v9  ;;  %3535 = vst [vmem:[#allocation57_spill] sm:$0xff] %v2936_v4  ;;  %v162_v28 = vld [vmem:[#allocation7 + $0x238] sm:$0xff]  ;;  %v193_v31 = vld [vmem:[#allocation7 + $0x330] sm:$0xff]  ;;  %v2945_v32 = vpack.c.bf16 %v210_v2, %v209_v1  ;;  %v180_v41 = vld [vmem:[#allocation7 + $0x2c8] sm:$0xff] }
  0x6e   :  { %482 = vmatmul.mubr.f32.vlgmr.msra.gmra.mrb[0].mxu1 %v2908_v10  ;;  %2135 = vmatpush3.bf16.msra.mxu0 %v2910_v11  ;;  %3536 = vst [vmem:[#allocation58_spill] sm:$0xff] %v2940_v6  ;;  %3537 = vst [vmem:[#allocation59_spill] sm:$0xff] %v2942_v18  ;;  %v194_v33 = vld [vmem:[#allocation7 + $0x338] sm:$0xff]  ;;  %v211_v47 = vld [vmem:[#allocation7 + $0x3c0] sm:$0xff]  ;;  %v2958_v61 = vpack.c.bf16 %v180_v41, %v179_v40 }
  0x6f   :  { %2167 = vmatpush3.bf16.msra.mxu1 %v2914_v13  ;;  %2137 = vmatprep.subr.bf16.mxu0 %v2916_v15  ;;  %3538 = vst [vmem:[#allocation60_spill] sm:$0xff] %v2945_v32  ;;  %v212_v48 = vld [vmem:[#allocation7 + $0x3c8] sm:$0xff]  ;;  %v2952_v58 = vld [vmem:[#allocation2 + $0x38] sm:$0xff]  ;;  %v2956_v59 = vpack.c.bf16 %v194_v33, %v193_v31  ;;  %v163_v1 = vld [vmem:[#allocation7 + $0x240] sm:$0xff] }
  0x70   :  { %2169 = vmatprep.subr.bf16.mxu1 %v2919_v29  ;;  %v2950_v49 = vld [vmem:[#allocation2 + $0x28] sm:$0xff]  ;;  %3540 = vst [vmem:[#allocation62_spill] sm:$0xff] %v2952_v58  ;;  %3542 = vst [vmem:[#allocation64_spill] sm:$0xff] %v2958_v61  ;;  %621 = vmatprep.mubr.f32.mxu1 %v2952_v58  ;;  %v165_v41 = vld [vmem:[#allocation7 + $0x250] sm:$0xff] }
  0x71   :  { %3541 = vst [vmem:[#allocation63_spill] sm:$0xff] %v2956_v59  ;;  %v164_v2 = vld [vmem:[#allocation7 + $0x248] sm:$0xff]  ;;  %551 = vmatprep.mubr.f32.mxu0 %v2950_v49  ;;  %v183_v29 = vld [vmem:[#allocation7 + $0x2e0] sm:$0xff]  ;;  %v273_v54 = vld [vmem:[#allocation8 + $0x1b0] sm:$0xff] }
  0x72   :  { %2139 = vmatpush3.bf16.msra.mxu0 %v2924_v42  ;;  %v213_v42 = vld [vmem:[#allocation7 + $0x3d0] sm:$0xff]  ;;  %v2966_v31 = vpack.c.bf16 %v164_v2, %v163_v1  ;;  %v215_v1 = vld [vmem:[#allocation7 + $0x3e0] sm:$0xff]  ;;  %v216_v2 = vld [vmem:[#allocation7 + $0x3e8] sm:$0xff] }
  0x73   :  { %2171 = vmatpush3.bf16.msra.mxu1 %v2928_v45  ;;  %2141 = vmatprep.subr.bf16.mxu0 %v2930_v46  ;;  %v2948_v45 = vpack.c.bf16 %v162_v28, %v161_v22  ;;  %v196_v22 = vld [vmem:[#allocation7 + $0x348] sm:$0xff]  ;;  %v181_v28 = vld [vmem:[#allocation7 + $0x2d0] sm:$0xff]  ;;  %v182_v46 = vld [vmem:[#allocation7 + $0x2d8] sm:$0xff] }
  0x74   :  { %2173 = vmatprep.subr.bf16.mxu1 %v2933_v57  ;;  %v195_v57 = vld [vmem:[#allocation7 + $0x340] sm:$0xff]  ;;  %3544 = vst [vmem:[#allocation66_spill] sm:$0xff] %v2966_v31  ;;  %v2972_v40 = vpack.c.bf16 %v182_v46, %v181_v28  ;;  %v2987_v28 = vpack.c.bf16 %v216_v2, %v215_v1  ;;  %v201_v1 = vld [vmem:[#allocation7 + $0x370] sm:$0xff]  ;;  %v240_v13 = vld [vmem:[#allocation8 + $0xa8] sm:$0xff] }
  0x75   :  { %3539 = vst [vmem:[#allocation61_spill] sm:$0xff] %v2948_v45  ;;  %v2970_v33 = vpack.c.bf16 %v196_v22, %v195_v57  ;;  %v167_v22 = vld [vmem:[#allocation7 + $0x260] sm:$0xff]  ;;  %v256_v55 = vld [vmem:[#allocation8 + $0x128] sm:$0xff]  ;;  %v274_v53 = vld [vmem:[#allocation8 + $0x1b8] sm:$0xff] }
  0x76   :  { %2143 = vmatpush3.bf16.msra.mxu0 %v2936_v4  ;;  %v2961_v4 = vpack.c.bf16 %v212_v48, %v211_v47  ;;  %3546 = vst [vmem:[#allocation68_spill] sm:$0xff] %v2972_v40  ;;  %v166_v47 = vld [vmem:[#allocation7 + $0x258] sm:$0xff]  ;;  %v197_v48 = vld [vmem:[#allocation7 + $0x350] sm:$0xff]  ;;  %3551 = vst [vmem:[#allocation73_spill] sm:$0xff] %v2987_v28  ;;  %v3059_v44 = vpack.c.bf16 %v274_v53, %v273_v54 }
  0x77   :  { %2175 = vmatpush3.bf16.msra.mxu1 %v2940_v6  ;;  %2145 = vmatprep.subr.bf16.mxu0 %v2942_v18  ;;  %v214_v6 = vld [vmem:[#allocation7 + $0x3d8] sm:$0xff]  ;;  %3545 = vst [vmem:[#allocation67_spill] sm:$0xff] %v2970_v33  ;;  %v239_v15 = vld [vmem:[#allocation8 + $0xa0] sm:$0xff]  ;;  %v244_v35 = vld [vmem:[#allocation8 + $0xc8] sm:$0xff] }
  0x78   :  { %2177 = vmatprep.subr.bf16.mxu1 %v2945_v32  ;;  %3543 = vst [vmem:[#allocation65_spill] sm:$0xff] %v2961_v4  ;;  %v2975_v32 = vpack.c.bf16 %v214_v6, %v213_v42  ;;  %v198_v18 = vld [vmem:[#allocation7 + $0x358] sm:$0xff]  ;;  %v168_v42 = vld [vmem:[#allocation7 + $0x268] sm:$0xff]  ;;  %v199_v6 = vld [vmem:[#allocation7 + $0x360] sm:$0xff] }
  0x79   :  { %v2982_v46 = vpack.c.bf16 %v198_v18, %v197_v48  ;;  %v169_v18 = vld [vmem:[#allocation7 + $0x270] sm:$0xff]  ;;  %v170_v48 = vld [vmem:[#allocation7 + $0x278] sm:$0xff]  ;;  %v255_v11 = vld [vmem:[#allocation8 + $0x120] sm:$0xff] }
  0x7a   :  { %2147 = vmatpush3.bf16.msra.mxu0 %v2948_v45  ;;  %3547 = vst [vmem:[#allocation69_spill] sm:$0xff] %v2975_v32  ;;  %v184_v45 = vld [vmem:[#allocation7 + $0x2e8] sm:$0xff]  ;;  %v258_v37 = vld [vmem:[#allocation8 + $0x138] sm:$0xff]  ;;  %v243_v36 = vld [vmem:[#allocation8 + $0xc0] sm:$0xff] }
  0x7b   :  { %2179 = vmatpush3.bf16.msra.mxu1 %v2956_v59  ;;  %2149 = vmatprep.subr.bf16.mxu0 %v2958_v61  ;;  %v2978_v59 = vpack.c.bf16 %v166_v47, %v165_v41  ;;  %3549 = vst [vmem:[#allocation71_spill] sm:$0xff] %v2982_v46  ;;  %v2984_v57 = vpack.c.bf16 %v184_v45, %v183_v29  ;;  %v185_v61 = vld [vmem:[#allocation7 + $0x2f0] sm:$0xff]  ;;  %v218_v47 = vld [vmem:[#allocation7 + $0x3f8] sm:$0xff]  ;;  %v228_v53 = vld [vmem:[#allocation8 + $0x48] sm:$0xff] }
  0x7c   :  { %2181 = vmatprep.subr.bf16.mxu1 %v2961_v4  ;;  %v200_v4 = vld [vmem:[#allocation7 + $0x368] sm:$0xff]  ;;  %v217_v41 = vld [vmem:[#allocation7 + $0x3f0] sm:$0xff]  ;;  %v259_v54 = vld [vmem:[#allocation8 + $0x140] sm:$0xff] }
  0x7d   :  { %3548 = vst [vmem:[#allocation70_spill] sm:$0xff] %v2978_v59  ;;  %3550 = vst [vmem:[#allocation72_spill] sm:$0xff] %v2984_v57  ;;  %v2994_v29 = vpack.c.bf16 %v200_v4, %v199_v6  ;;  %v2999_v2 = vpack.c.bf16 %v218_v47, %v217_v41  ;;  %v220_v6 = vld [vmem:[#allocation8 + $0x8] sm:$0xff]  ;;  %v251_v41 = vld [vmem:[#allocation8 + $0x100] sm:$0xff] }
  0x7e   :  { %2151 = vmatpush3.bf16.msra.mxu0 %v2966_v31  ;;  %v186_v31 = vld [vmem:[#allocation7 + $0x2f8] sm:$0xff]  ;;  %v260_v20 = vld [vmem:[#allocation8 + $0x148] sm:$0xff]  ;;  %v245_v19 = vld [vmem:[#allocation8 + $0xd0] sm:$0xff] }
  0x7f   :  { %2183 = vmatpush3.bf16.msra.mxu1 %v2970_v33  ;;  %2153 = vmatprep.subr.bf16.mxu0 %v2972_v40  ;;  %v2990_v33 = vpack.c.bf16 %v168_v42, %v167_v22  ;;  %3553 = vst [vmem:[#allocation75_spill] sm:$0xff] %v2994_v29  ;;  %v2996_v45 = vpack.c.bf16 %v186_v31, %v185_v61  ;;  %3555 = vst [vmem:[#allocation77_spill] sm:$0xff] %v2999_v2  ;;  %v235_v40 = vld [vmem:[#allocation8 + $0x80] sm:$0xff]  ;;  %v268_v42 = vld [vmem:[#allocation8 + $0x188] sm:$0xff] }
  0x80   :  { %2185 = vmatprep.subr.bf16.mxu1 %v2975_v32  ;;  %v202_v32 = vld [vmem:[#allocation7 + $0x378] sm:$0xff]  ;;  %v267_v22 = vld [vmem:[#allocation8 + $0x180] sm:$0xff]  ;;  %v248_v62 = vld [vmem:[#allocation8 + $0xe8] sm:$0xff] }
  0x81   :  { %3552 = vst [vmem:[#allocation74_spill] sm:$0xff] %v2990_v33  ;;  %3554 = vst [vmem:[#allocation76_spill] sm:$0xff] %v2996_v45  ;;  %v3006_v4 = vpack.c.bf16 %v202_v32, %v201_v1  ;;  %v219_v31 = vld [vmem:[#allocation8] sm:$0xff]  ;;  %v3011_v47 = vpack.c.bf16 %v268_v42, %v267_v22  ;;  %v3016_v32 = vld [vmem:[#allocation2 + $0x30] sm:$0xff] }
  0x82   :  { %2155 = vmatpush3.bf16.msra.mxu0 %v2978_v59  ;;  %v236_v59 = vld [vmem:[#allocation8 + $0x88] sm:$0xff]  ;;  %3559 = vst [vmem:[#allocation81_spill] sm:$0xff] %v3016_v32  ;;  %v221_v22 = vld [vmem:[#allocation8 + $0x10] sm:$0xff]  ;;  %v222_v42 = vld [vmem:[#allocation8 + $0x18] sm:$0xff] }
  0x83   :  { %2187 = vmatpush3.bf16.msra.mxu1 %v2982_v46  ;;  %2157 = vmatprep.subr.bf16.mxu0 %v2984_v57  ;;  %v3002_v46 = vpack.c.bf16 %v170_v48, %v169_v18  ;;  %3557 = vst [vmem:[#allocation79_spill] sm:$0xff] %v3006_v4  ;;  %v3008_v61 = vpack.c.bf16 %v236_v59, %v235_v40  ;;  %v237_v57 = vld [vmem:[#allocation8 + $0x90] sm:$0xff]  ;;  %v270_v48 = vld [vmem:[#allocation8 + $0x198] sm:$0xff]  ;;  %v247_v63 = vld [vmem:[#allocation8 + $0xe0] sm:$0xff] }
  0x84   :  { %2189 = vmatprep.subr.bf16.mxu1 %v2987_v28  ;;  %v252_v28 = vld [vmem:[#allocation8 + $0x108] sm:$0xff]  ;;  %v269_v18 = vld [vmem:[#allocation8 + $0x190] sm:$0xff]  ;;  %v3018_v59 = vpack.c.bf16 %v220_v6, %v219_v31  ;;  %v271_v31 = vld [vmem:[#allocation8 + $0x1a0] sm:$0xff] }
  0x85   :  { %3556 = vst [vmem:[#allocation78_spill] sm:$0xff] %v3002_v46  ;;  %v3022_v40 = vpack.c.bf16 %v252_v28, %v251_v41  ;;  %v272_v6 = vld [vmem:[#allocation8 + $0x1a8] sm:$0xff]  ;;  %v3042_v41 = vpack.c.bf16 %v240_v13, %v239_v15  ;;  %v3054_v15 = vpack.c.bf16 %v256_v55, %v255_v11  ;;  %v3068_v11 = vpack.c.bf16 %v244_v35, %v243_v36  ;;  %v246_v14 = vld [vmem:[#allocation8 + $0xd8] sm:$0xff]  ;;  %v249_v51 = vld [vmem:[#allocation8 + $0xf0] sm:$0xff] }
  0x86   :  { %2159 = vmatpush3.bf16.msra.mxu0 %v2990_v33  ;;  %v238_v33 = vld [vmem:[#allocation8 + $0x98] sm:$0xff]  ;;  %v3045_v60 = vpack.c.bf16 %v272_v6, %v271_v31  ;;  %v257_v6 = vld [vmem:[#allocation8 + $0x130] sm:$0xff]  ;;  %v3078_v35 = vpack.c.bf16 %v260_v20, %v259_v54  ;;  %v3080_v36 = vpack.c.bf16 %v246_v14, %v245_v19  ;;  %v3092_v19 = vpack.c.bf16 %v248_v62, %v247_v63  ;;  %v231_v20 = vld [vmem:[#allocation8 + $0x60] sm:$0xff] }
  0x87   :  { %2191 = vmatpush3.bf16.msra.mxu1 %v2994_v29  ;;  %2161 = vmatprep.subr.bf16.mxu0 %v2996_v45  ;;  %v3014_v29 = vld [vmem:[#allocation2 + $0x20] sm:$0xff]  ;;  %v3024_v1 = vpack.c.bf16 %v238_v33, %v237_v57  ;;  %v254_v45 = vld [vmem:[#allocation8 + $0x118] sm:$0xff]  ;;  %v3034_v33 = vpack.c.bf16 %v222_v42, %v221_v22  ;;  %v241_v22 = vld [vmem:[#allocation8 + $0xb0] sm:$0xff]  ;;  %v3066_v55 = vpack.c.bf16 %v258_v37, %v257_v6 }
  0x88   :  { %2193 = vmatprep.subr.bf16.mxu1 %v2999_v2  ;;  %3558 = vst [vmem:[#allocation80_spill] sm:$0xff] %v3014_v29  ;;  %v253_v2 = vld [vmem:[#allocation8 + $0x110] sm:$0xff]  ;;  %v3036_v57 = vld [vmem:[#allocation5 + $0x18] sm:$0xff]  ;;  %v232_v54 = vld [vmem:[#allocation8 + $0x68] sm:$0xff] }
  0x89   :  { %3561 = vst [vmem:[#allocation83_spill] sm:$0xff] %v3036_v57  ;;  %v3040_v28 = vpack.c.bf16 %v254_v45, %v253_v2  ;;  %v242_v42 = vld [vmem:[#allocation8 + $0xb8] sm:$0xff]  ;;  %v225_v2 = vld [vmem:[#allocation8 + $0x30] sm:$0xff]  ;;  %v264_v52 = vld [vmem:[#allocation8 + $0x168] sm:$0xff]  ;;  %v3098_v43 = vpack.c.bf16 %v232_v54, %v231_v20 }
  0x8a   :  { %2163 = vmatpush3.bf16.msra.mxu0 %v3002_v46  ;;  %v3027_v46 = vpack.c.bf16 %v270_v48, %v269_v18  ;;  %v223_v18 = vld [vmem:[#allocation8 + $0x20] sm:$0xff]  ;;  %v224_v48 = vld [vmem:[#allocation8 + $0x28] sm:$0xff]  ;;  %v3056_v45 = vpack.c.bf16 %v242_v42, %v241_v22  ;;  %v226_v31 = vld [vmem:[#allocation8 + $0x38] sm:$0xff] }
  0x8b   :  { %2195 = vmatpush3.bf16.msra.mxu1 %v3006_v4  ;;  %2197 = vmatprep.subr.bf16.mxu0 %v3008_v61  ;;  %v3030_v4 = vld [vmem:[#allocation5 + $0x8] sm:$0xff]  ;;  %v3050_v13 = vpack.c.bf16 %v224_v48, %v223_v18  ;;  %v275_v18 = vld [vmem:[#allocation8 + $0x1c0] sm:$0xff]  ;;  %v3062_v27 = vpack.c.bf16 %v226_v31, %v225_v2  ;;  %v277_v2 = vld [vmem:[#allocation8 + $0x1d0] sm:$0xff] }
  0x8c   :  { %2229 = vmatprep.subr.bf16.mxu1 %v3011_v47  ;;  %3560 = vst [vmem:[#allocation82_spill] sm:$0xff] %v3030_v4  ;;  %v276_v48 = vld [vmem:[#allocation8 + $0x1c8] sm:$0xff]  ;;  %v227_v22 = vld [vmem:[#allocation8 + $0x40] sm:$0xff]  ;;  %v278_v31 = vld [vmem:[#allocation8 + $0x1d8] sm:$0xff] }
  0x8d   :  { %552 = vmatmul.mubr.f32.vlgmr.msra.gmra.mrb[2].mxu0 %v3014_v29  ;;  %v3071_v42 = vpack.c.bf16 %v276_v48, %v275_v18  ;;  %v3074_v5 = vpack.c.bf16 %v228_v53, %v227_v22  ;;  %v229_v37 = vld [vmem:[#allocation8 + $0x50] sm:$0xff]  ;;  %v230_v6 = vld [vmem:[#allocation8 + $0x58] sm:$0xff]  ;;  %v3083_v48 = vpack.c.bf16 %v278_v31, %v277_v2  ;;  %v279_v22 = vld [vmem:[#allocation8 + $0x1e0] sm:$0xff] }
  0x8e   :  { %622 = vmatmul.mubr.f32.vlgmr.msra.gmra.mrb[2].mxu1 %v3016_v32  ;;  %2199 = vmatpush3.bf16.msra.mxu0 %v3018_v59  ;;  %v261_v18 = vld [vmem:[#allocation8 + $0x150] sm:$0xff]  ;;  %v262_v0 = vld [vmem:[#allocation8 + $0x158] sm:$0xff]  ;;  %v280_v53 = vld [vmem:[#allocation8 + $0x1e8] sm:$0xff]  ;;  %v3086_v56 = vpack.c.bf16 %v230_v6, %v229_v37 }
  0x8f   :  { %2231 = vmatpush3.bf16.msra.mxu1 %v3022_v40  ;;  %2201 = vmatprep.subr.bf16.mxu0 %v3024_v1  ;;  %v3090_v14 = vpack.c.bf16 %v262_v0, %v261_v18  ;;  %v263_v2 = vld [vmem:[#allocation8 + $0x160] sm:$0xff]  ;;  %v3095_v31 = vpack.c.bf16 %v280_v53, %v279_v22  ;;  %v250_v50 = vld [vmem:[#allocation8 + $0xf8] sm:$0xff]  ;;  %v281_v37 = vld [vmem:[#allocation8 + $0x1f0] sm:$0xff] }
  0x90   :  { %2233 = vmatprep.subr.bf16.mxu1 %v3027_v46  ;;  %691 = vmatprep.mubr.f32.mxu0 %v3030_v4  ;;  %v282_v6 = vld [vmem:[#allocation8 + $0x1f8] sm:$0xff]  ;;  %v3102_v62 = vpack.c.bf16 %v264_v52, %v263_v2  ;;  %v3104_v63 = vpack.c.bf16 %v250_v50, %v249_v51  ;;  %v233_v0 = vld [vmem:[#allocation8 + $0x70] sm:$0xff]  ;;  %v299_v38 = vld [vmem:[#allocation8 + $0x280] sm:$0xff] }
  0x91   :  { %761 = vmatprep.mubr.f32.mxu1 %v3036_v57  ;;  %v234_v18 = vld [vmem:[#allocation8 + $0x78] sm:$0xff]  ;;  %v265_v22 = vld [vmem:[#allocation8 + $0x170] sm:$0xff]  ;;  %v3107_v53 = vpack.c.bf16 %v282_v6, %v281_v37  ;;  %v300_v34 = vld [vmem:[#allocation8 + $0x288] sm:$0xff] }
  0x92   :  { %2203 = vmatpush3.bf16.msra.mxu0 %v3034_v33  ;;  %v266_v39 = vld [vmem:[#allocation8 + $0x178] sm:$0xff]  ;;  %v331_v20 = vld [vmem:[#allocation8 + $0x380] sm:$0xff]  ;;  %v332_v54 = vld [vmem:[#allocation8 + $0x388] sm:$0xff]  ;;  %v3110_v30 = vpack.c.bf16 %v234_v18, %v233_v0  ;;  %v3116_v51 = vpack.c.bf16 %v300_v34, %v299_v38 }
  0x93   :  { %2235 = vmatpush3.bf16.msra.mxu1 %v3040_v28  ;;  %2205 = vmatprep.subr.bf16.mxu0 %v3042_v41  ;;  %v3114_v50 = vpack.c.bf16 %v266_v39, %v265_v22  ;;  %v283_v52 = vld [vmem:[#allocation8 + $0x200] sm:$0xff]  ;;  %v284_v2 = vld [vmem:[#allocation8 + $0x208] sm:$0xff]  ;;  %v3119_v6 = vpack.c.bf16 %v332_v54, %v331_v20  ;;  %v301_v25 = vld [vmem:[#allocation8 + $0x290] sm:$0xff] }
  0x94   :  { %2237 = vmatprep.subr.bf16.mxu1 %v3045_v60  ;;  %v315_v37 = vld [vmem:[#allocation8 + $0x300] sm:$0xff]  ;;  %v316_v26 = vld [vmem:[#allocation8 + $0x308] sm:$0xff]  ;;  %v302_v21 = vld [vmem:[#allocation8 + $0x298] sm:$0xff]  ;;  %v3126_v34 = vpack.c.bf16 %v284_v2, %v283_v52 }
  0x95   :  { %v333_v0 = vld [vmem:[#allocation8 + $0x390] sm:$0xff]  ;;  %v334_v18 = vld [vmem:[#allocation8 + $0x398] sm:$0xff]  ;;  %v3122_v57 = vld [vmem:[#allocation5] sm:$0xff]  ;;  %v3130_v38 = vpack.c.bf16 %v316_v26, %v315_v37  ;;  %v3132_v22 = vpack.c.bf16 %v302_v21, %v301_v25 }
  0x96   :  { %2207 = vmatpush3.bf16.msra.mxu0 %v3050_v13  ;;  %3562 = vst [vmem:[#allocation84_spill] sm:$0xff] %v3122_v57  ;;  %v3124_v39 = vld [vmem:[#allocation5 + $0x10] sm:$0xff]  ;;  %v286_v54 = vld [vmem:[#allocation8 + $0x218] sm:$0xff]  ;;  %v3135_v17 = vpack.c.bf16 %v334_v18, %v333_v0  ;;  %v303_v12 = vld [vmem:[#allocation8 + $0x2a0] sm:$0xff] }
  0x97   :  { %2239 = vmatpush3.bf16.msra.mxu1 %v3054_v15  ;;  %2209 = vmatprep.subr.bf16.mxu0 %v3056_v45  ;;  %3563 = vst [vmem:[#allocation85_spill] sm:$0xff] %v3124_v39  ;;  %v285_v20 = vld [vmem:[#allocation8 + $0x210] sm:$0xff]  ;;  %v318_v16 = vld [vmem:[#allocation8 + $0x318] sm:$0xff]  ;;  %v304_v32 = vld [vmem:[#allocation8 + $0x2a8] sm:$0xff] }
  0x98   :  { %2241 = vmatprep.subr.bf16.mxu1 %v3059_v44  ;;  %v317_v4 = vld [vmem:[#allocation8 + $0x310] sm:$0xff]  ;;  %v335_v52 = vld [vmem:[#allocation8 + $0x3a0] sm:$0xff]  ;;  %v336_v2 = vld [vmem:[#allocation8 + $0x3a8] sm:$0xff]  ;;  %v3142_v21 = vpack.c.bf16 %v286_v54, %v285_v20  ;;  %v3150_v37 = vpack.c.bf16 %v304_v32, %v303_v12 }
  0x99   :  { %v3138_v8 = vld [vmem:[#allocation5 + $0x28] sm:$0xff]  ;;  %v3144_v25 = vld [vmem:[#allocation5 + $0x38] sm:$0xff]  ;;  %v3148_v26 = vpack.c.bf16 %v318_v16, %v317_v4  ;;  %v287_v0 = vld [vmem:[#allocation8 + $0x220] sm:$0xff] }
  0x9a   :  { %2211 = vmatpush3.bf16.msra.mxu0 %v3062_v27  ;;  %3564 = vst [vmem:[#allocation86_spill] sm:$0xff] %v3138_v8  ;;  %3565 = vst [vmem:[#allocation87_spill] sm:$0xff] %v3142_v21  ;;  %v288_v18 = vld [vmem:[#allocation8 + $0x228] sm:$0xff]  ;;  %v305_v20 = vld [vmem:[#allocation8 + $0x2b0] sm:$0xff] }
  0x9b   :  { %2243 = vmatpush3.bf16.msra.mxu1 %v3066_v55  ;;  %2213 = vmatprep.subr.bf16.mxu0 %v3068_v11  ;;  %3566 = vst [vmem:[#allocation88_spill] sm:$0xff] %v3144_v25  ;;  %3567 = vst [vmem:[#allocation89_spill] sm:$0xff] %v3148_v26  ;;  %v320_v29 = vld [vmem:[#allocation8 + $0x328] sm:$0xff]  ;;  %v306_v54 = vld [vmem:[#allocation8 + $0x2b8] sm:$0xff]  ;;  %v3158_v12 = vpack.c.bf16 %v288_v18, %v287_v0 }
  0x9c   :  { %2245 = vmatprep.subr.bf16.mxu1 %v3071_v42  ;;  %3568 = vst [vmem:[#allocation90_spill] sm:$0xff] %v3150_v37  ;;  %v337_v7 = vld [vmem:[#allocation8 + $0x3b0] sm:$0xff]  ;;  %v338_v3 = vld [vmem:[#allocation8 + $0x3b8] sm:$0xff]  ;;  %v3164_v4 = vpack.c.bf16 %v306_v54, %v305_v20  ;;  %v307_v58 = vld [vmem:[#allocation8 + $0x2c0] sm:$0xff] }
  0x9d   :  { %3570 = vst [vmem:[#allocation92_spill] sm:$0xff] %v3158_v12  ;;  %v289_v32 = vld [vmem:[#allocation8 + $0x230] sm:$0xff]  ;;  %v339_v0 = vld [vmem:[#allocation8 + $0x3c0] sm:$0xff]  ;;  %v340_v18 = vld [vmem:[#allocation8 + $0x3c8] sm:$0xff] }
  0x9e   :  { %2215 = vmatpush3.bf16.msra.mxu0 %v3074_v5  ;;  %3572 = vst [vmem:[#allocation94_spill] sm:$0xff] %v3164_v4  ;;  %v291_v20 = vld [vmem:[#allocation8 + $0x240] sm:$0xff]  ;;  %v3179_v54 = vpack.c.bf16 %v340_v18, %v339_v0  ;;  %v325_v0 = vld [vmem:[#allocation8 + $0x350] sm:$0xff] }
  0x9f   :  { %2247 = vmatpush3.bf16.msra.mxu1 %v3078_v35  ;;  %2217 = vmatprep.subr.bf16.mxu0 %v3080_v36 }
  0xa0   :  { %2249 = vmatprep.subr.bf16.mxu1 %v3083_v48  ;;  %3577 = vst [vmem:[#allocation99_spill] sm:$0xff] %v3179_v54 }
  0xa2   :  { %2219 = vmatpush3.bf16.msra.mxu0 %v3086_v56 }
  0xa3   :  { %2251 = vmatpush3.bf16.msra.mxu1 %v3090_v14  ;;  %2221 = vmatprep.subr.bf16.mxu0 %v3092_v19 }
  0xa4   :  { %2253 = vmatprep.subr.bf16.mxu1 %v3095_v31 }
  0xa6   :  { %2223 = vmatpush3.bf16.msra.mxu0 %v3098_v43 }
  0xa7   :  { %2255 = vmatpush3.bf16.msra.mxu1 %v3102_v62  ;;  %2225 = vmatprep.subr.bf16.mxu0 %v3104_v63 }
  0xa8   :  { %2257 = vmatprep.subr.bf16.mxu1 %v3107_v53 }
  0xaa   :  { %2227 = vmatpush3.bf16.msra.mxu0 %v3110_v30 }
  0xab   :  { %2259 = vmatpush3.bf16.msra.mxu1 %v3114_v50  ;;  %2261 = vmatprep.subr.bf16.mxu0 %v3116_v51 }
  0xac   :  { %2293 = vmatprep.subr.bf16.mxu1 %v3119_v6 }
  0xad   :  { %692 = vmatmul.mubr.f32.vlgmr.msra.gmra.mrb[4].mxu0 %v3122_v57  ;;  %v319_v57 = vld [vmem:[#allocation8 + $0x320] sm:$0xff] }
  0xae   :  { %762 = vmatmul.mubr.f32.vlgmr.msra.gmra.mrb[4].mxu1 %v3124_v39  ;;  %2263 = vmatpush3.bf16.msra.mxu0 %v3126_v34  ;;  %v3153_v39 = vpack.c.bf16 %v336_v2, %v335_v52  ;;  %v3162_v16 = vpack.c.bf16 %v320_v29, %v319_v57  ;;  %v290_v52 = vld [vmem:[#allocation8 + $0x238] sm:$0xff]  ;;  %v321_v2 = vld [vmem:[#allocation8 + $0x330] sm:$0xff] }
  0xaf   :  { %2295 = vmatpush3.bf16.msra.mxu1 %v3130_v38  ;;  %2265 = vmatprep.subr.bf16.mxu0 %v3132_v22 }
  0xb0   :  { %2297 = vmatprep.subr.bf16.mxu1 %v3135_v17  ;;  %3569 = vst [vmem:[#allocation91_spill] sm:$0xff] %v3153_v39  ;;  %831 = vmatprep.mubr.f32.mxu0 %v3138_v8  ;;  %3571 = vst [vmem:[#allocation93_spill] sm:$0xff] %v3162_v16  ;;  %v3167_v8 = vpack.c.bf16 %v338_v3, %v337_v7  ;;  %v292_v3 = vld [vmem:[#allocation8 + $0x248] sm:$0xff]  ;;  %v323_v7 = vld [vmem:[#allocation8 + $0x340] sm:$0xff] }
  0xb1   :  { %901 = vmatprep.mubr.f32.mxu1 %v3144_v25  ;;  %v322_v25 = vld [vmem:[#allocation8 + $0x338] sm:$0xff] }
  0xb2   :  { %2267 = vmatpush3.bf16.msra.mxu0 %v3142_v21  ;;  %3573 = vst [vmem:[#allocation95_spill] sm:$0xff] %v3167_v8  ;;  %v308_v21 = vld [vmem:[#allocation8 + $0x2c8] sm:$0xff]  ;;  %v3174_v29 = vpack.c.bf16 %v322_v25, %v321_v2  ;;  %v293_v25 = vld [vmem:[#allocation8 + $0x250] sm:$0xff]  ;;  %v294_v2 = vld [vmem:[#allocation8 + $0x258] sm:$0xff] }
  0xb3   :  { %2299 = vmatpush3.bf16.msra.mxu1 %v3148_v26  ;;  %2269 = vmatprep.subr.bf16.mxu0 %v3150_v37  ;;  %v3170_v26 = vpack.c.bf16 %v290_v52, %v289_v32  ;;  %v3176_v57 = vpack.c.bf16 %v308_v21, %v307_v58  ;;  %v309_v37 = vld [vmem:[#allocation8 + $0x2d0] sm:$0xff]  ;;  %v342_v52 = vld [vmem:[#allocation8 + $0x3d8] sm:$0xff] }
  0xb4   :  { %2301 = vmatprep.subr.bf16.mxu1 %v3153_v39  ;;  %3575 = vst [vmem:[#allocation97_spill] sm:$0xff] %v3174_v29  ;;  %v324_v39 = vld [vmem:[#allocation8 + $0x348] sm:$0xff]  ;;  %v341_v32 = vld [vmem:[#allocation8 + $0x3d0] sm:$0xff] }
  0xb5   :  { %3574 = vst [vmem:[#allocation96_spill] sm:$0xff] %v3170_v26  ;;  %3576 = vst [vmem:[#allocation98_spill] sm:$0xff] %v3176_v57  ;;  %v3186_v58 = vpack.c.bf16 %v324_v39, %v323_v7  ;;  %v3191_v18 = vpack.c.bf16 %v342_v52, %v341_v32  ;;  %v296_v7 = vld [vmem:[#allocation8 + $0x268] sm:$0xff]  ;;  %v327_v32 = vld [vmem:[#allocation8 + $0x360] sm:$0xff] }
  0xb6   :  { %2271 = vmatpush3.bf16.msra.mxu0 %v3158_v12  ;;  %v310_v12 = vld [vmem:[#allocation8 + $0x2d8] sm:$0xff] }
  0xb7   :  { %2303 = vmatpush3.bf16.msra.mxu1 %v3162_v16  ;;  %2273 = vmatprep.subr.bf16.mxu0 %v3164_v4  ;;  %v3182_v16 = vpack.c.bf16 %v292_v3, %v291_v20  ;;  %3579 = vst [vmem:[#allocation101_spill] sm:$0xff] %v3186_v58  ;;  %v3188_v21 = vpack.c.bf16 %v310_v12, %v309_v37  ;;  %3580 = vst [vmem:[#allocation102_spill] sm:$0xff] %v3191_v18  ;;  %v311_v4 = vld [vmem:[#allocation8 + $0x2e0] sm:$0xff]  ;;  %v344_v3 = vld [vmem:[#allocation8 + $0x3e8] sm:$0xff] }
  0xb8   :  { %2305 = vmatprep.subr.bf16.mxu1 %v3167_v8  ;;  %v326_v8 = vld [vmem:[#allocation8 + $0x358] sm:$0xff]  ;;  %v343_v20 = vld [vmem:[#allocation8 + $0x3e0] sm:$0xff] }
  0xb9   :  { %3578 = vst [vmem:[#allocation100_spill] sm:$0xff] %v3182_v16  ;;  %v3198_v39 = vpack.c.bf16 %v326_v8, %v325_v0  ;;  %v295_v12 = vld [vmem:[#allocation8 + $0x260] sm:$0xff]  ;;  %v3203_v52 = vpack.c.bf16 %v344_v3, %v343_v20  ;;  %v298_v0 = vld [vmem:[#allocation8 + $0x278] sm:$0xff]  ;;  %v329_v3 = vld [vmem:[#allocation8 + $0x370] sm:$0xff] }
  0xba   :  { %2275 = vmatpush3.bf16.msra.mxu0 %v3170_v26  ;;  %v312_v26 = vld [vmem:[#allocation8 + $0x2e8] sm:$0xff] }
  0xbb   :  { %2307 = vmatpush3.bf16.msra.mxu1 %v3174_v29  ;;  %2277 = vmatprep.subr.bf16.mxu0 %v3176_v57  ;;  %v3194_v29 = vpack.c.bf16 %v294_v2, %v293_v25  ;;  %v3200_v37 = vpack.c.bf16 %v312_v26, %v311_v4  ;;  %v313_v57 = vld [vmem:[#allocation8 + $0x2f0] sm:$0xff]  ;;  %v346_v2 = vld [vmem:[#allocation8 + $0x3f8] sm:$0xff] }
  0xbc   :  { %2309 = vmatprep.subr.bf16.mxu1 %v3179_v54  ;;  %v328_v54 = vld [vmem:[#allocation8 + $0x368] sm:$0xff]  ;;  %v345_v25 = vld [vmem:[#allocation8 + $0x3f0] sm:$0xff] }
  0xbd   :  { %v3210_v8 = vpack.c.bf16 %v328_v54, %v327_v32  ;;  %v297_v4 = vld [vmem:[#allocation8 + $0x270] sm:$0xff]  ;;  %v3215_v20 = vpack.c.bf16 %v346_v2, %v345_v25  ;;  %v3631_v32 = vld [vmem:[#allocation45_spill] sm:$0xff]  ;;  %v3634_v2 = vld [vmem:[#allocation48_spill] sm:$0xff] }
  0xbe   :  { %2279 = vmatpush3.bf16.msra.mxu0 %v3182_v16  ;;  %v314_v16 = vld [vmem:[#allocation8 + $0x2f8] sm:$0xff]  ;;  %v3633_v25 = vld [vmem:[#allocation47_spill] sm:$0xff] }
  0xbf   :  { %2311 = vmatpush3.bf16.msra.mxu1 %v3186_v58  ;;  %2281 = vmatprep.subr.bf16.mxu0 %v3188_v21  ;;  %v3206_v58 = vpack.c.bf16 %v296_v7, %v295_v12  ;;  %v3212_v26 = vpack.c.bf16 %v314_v16, %v313_v57  ;;  %v3218_v12 = vpack.c.bf16 %v298_v0, %v297_v4  ;;  %v3226_v16 = vld [vmem:[#allocation5 + $0x20] sm:$0xff]  ;;  %v3230_v57 = vld [vmem:[#allocation5 + $0x30] sm:$0xff]  ;;  %v3630_v7 = vld [vmem:[#allocation44_spill] sm:$0xff] }
  0xc0   :  { %2313 = vmatprep.subr.bf16.mxu1 %v3191_v18  ;;  %v330_v18 = vld [vmem:[#allocation8 + $0x378] sm:$0xff]  ;;  %v3637_v4 = vld [vmem:[#allocation85_spill] sm:$0xff]  ;;  %v3638_v0 = vld [vmem:[#allocation50_spill] sm:$0xff] }
  0xc1   :  { %v3222_v54 = vpack.c.bf16 %v330_v18, %v329_v3  ;;  %v3627_v18 = vld [vmem:[#allocation41_spill] sm:$0xff]  ;;  %v3640_v3 = vld [vmem:[#allocation52_spill] sm:$0xff] }
  0xc2   :  { %2283 = vmatpush3.bf16.msra.mxu0 %v3194_v29 }
  0xc3   :  { %2315 = vmatpush3.bf16.msra.mxu1 %v3198_v39  ;;  %2285 = vmatprep.subr.bf16.mxu0 %v3200_v37 }
  0xc4   :  { %2317 = vmatprep.subr.bf16.mxu1 %v3203_v52 }
  0xc6   :  { %2287 = vmatpush3.bf16.msra.mxu0 %v3206_v58 }
  0xc7   :  { %2319 = vmatpush3.bf16.msra.mxu1 %v3210_v8  ;;  %2289 = vmatprep.subr.bf16.mxu0 %v3212_v26 }
  0xc8   :  { %2321 = vmatprep.subr.bf16.mxu1 %v3215_v20 }
  0xca   :  { %2291 = vmatpush3.bf16.msra.mxu0 %v3218_v12 }
  0xcb   :  { %2323 = vmatpush3.bf16.msra.mxu1 %v3222_v54  ;;  %2325 = vmatprep.subr.bf16.mxu0 %v3008_v61  ;;  %v3595_v61 = vld [vmem:[#allocation101_spill] sm:$0xff] }
  0xcc   :  { %2357 = vmatprep.subr.bf16.mxu1 %v3011_v47  ;;  %v3596_v47 = vld [vmem:[#allocation102_spill] sm:$0xff] }
  0xcd   :  { %832 = vmatmul.mubr.f32.vlgmr.msra.gmra.mrb[6].mxu0 %v3226_v16 }
  0xce   :  { %902 = vmatmul.mubr.f32.vlgmr.msra.gmra.mrb[6].mxu1 %v3230_v57  ;;  %2327 = vmatpush3.bf16.msra.mxu0 %v3018_v59  ;;  %v3597_v59 = vld [vmem:[#allocation15_spill] sm:$0xff] }
  0xcf   :  { %2359 = vmatpush3.bf16.msra.mxu1 %v3022_v40  ;;  %2329 = vmatprep.subr.bf16.mxu0 %v3024_v1  ;;  %v3598_v40 = vld [vmem:[#allocation16_spill] sm:$0xff] }
  0xd0   :  { %2361 = vmatprep.subr.bf16.mxu1 %v3027_v46  ;;  %971 = vmatprep.mubr.f32.mxu0 %v2872_v23  ;;  %v3585_v23 = vld [vmem:[#allocation91_spill] sm:$0xff]  ;;  %v3594_v46 = vld [vmem:[#allocation100_spill] sm:$0xff] }
  0xd1   :  { %1041 = vmatprep.mubr.f32.mxu1 %v2874_v24  ;;  %v3586_v24 = vld [vmem:[#allocation92_spill] sm:$0xff] }
  0xd2   :  { %2331 = vmatpush3.bf16.msra.mxu0 %v3034_v33  ;;  %v3599_v1 = vld [vmem:[#allocation80_spill] sm:$0xff]  ;;  %v3600_v33 = vld [vmem:[#allocation17_spill] sm:$0xff] }
  0xd3   :  { %2363 = vmatpush3.bf16.msra.mxu1 %v3040_v28  ;;  %2333 = vmatprep.subr.bf16.mxu0 %v3042_v41  ;;  %v3601_v28 = vld [vmem:[#allocation81_spill] sm:$0xff]  ;;  %v3602_v41 = vld [vmem:[#allocation18_spill] sm:$0xff] }
  0xd4   :  { %2365 = vmatprep.subr.bf16.mxu1 %v3045_v60  ;;  %v3589_v60 = vld [vmem:[#allocation95_spill] sm:$0xff] }
  0xd6   :  { %2335 = vmatpush3.bf16.msra.mxu0 %v3050_v13  ;;  %v3603_v13 = vld [vmem:[#allocation19_spill] sm:$0xff] }
  0xd7   :  { %2367 = vmatpush3.bf16.msra.mxu1 %v3054_v15  ;;  %2337 = vmatprep.subr.bf16.mxu0 %v3056_v45  ;;  %v3604_v15 = vld [vmem:[#allocation20_spill] sm:$0xff]  ;;  %v3605_v45 = vld [vmem:[#allocation82_spill] sm:$0xff] }
  0xd8   :  { %2369 = vmatprep.subr.bf16.mxu1 %v3059_v44  ;;  %v3588_v44 = vld [vmem:[#allocation94_spill] sm:$0xff] }
  0xda   :  { %2339 = vmatpush3.bf16.msra.mxu0 %v3062_v27  ;;  %v3587_v27 = vld [vmem:[#allocation93_spill] sm:$0xff] }
  0xdb   :  { %2371 = vmatpush3.bf16.msra.mxu1 %v3066_v55  ;;  %2341 = vmatprep.subr.bf16.mxu0 %v3068_v11  ;;  %v3606_v55 = vld [vmem:[#allocation83_spill] sm:$0xff]  ;;  %v3607_v11 = vld [vmem:[#allocation21_spill] sm:$0xff] }
  0xdc   :  { %2373 = vmatprep.subr.bf16.mxu1 %v3071_v42  ;;  %v3608_v42 = vld [vmem:[#allocation22_spill] sm:$0xff] }
  0xde   :  { %2343 = vmatpush3.bf16.msra.mxu0 %v3074_v5  ;;  %v3584_v5 = vld [vmem:[#allocation90_spill] sm:$0xff] }
  0xdf   :  { %2375 = vmatpush3.bf16.msra.mxu1 %v3078_v35  ;;  %2345 = vmatprep.subr.bf16.mxu0 %v3080_v36  ;;  %v3609_v35 = vld [vmem:[#allocation23_spill] sm:$0xff]  ;;  %v3610_v36 = vld [vmem:[#allocation24_spill] sm:$0xff] }
  0xe0   :  { %2377 = vmatprep.subr.bf16.mxu1 %v3083_v48  ;;  %v3611_v48 = vld [vmem:[#allocation25_spill] sm:$0xff] }
  0xe2   :  { %2347 = vmatpush3.bf16.msra.mxu0 %v3086_v56  ;;  %v3583_v56 = vld [vmem:[#allocation89_spill] sm:$0xff] }
  0xe3   :  { %2379 = vmatpush3.bf16.msra.mxu1 %v3090_v14  ;;  %2349 = vmatprep.subr.bf16.mxu0 %v3092_v19  ;;  %v3612_v14 = vld [vmem:[#allocation26_spill] sm:$0xff]  ;;  %v3613_v19 = vld [vmem:[#allocation27_spill] sm:$0xff] }
  0xe4   :  { %2381 = vmatprep.subr.bf16.mxu1 %v3095_v31  ;;  %v3614_v31 = vld [vmem:[#allocation28_spill] sm:$0xff] }
  0xe6   :  { %2351 = vmatpush3.bf16.msra.mxu0 %v3098_v43  ;;  %v3582_v43 = vld [vmem:[#allocation87_spill] sm:$0xff] }
  0xe7   :  { %2383 = vmatpush3.bf16.msra.mxu1 %v3102_v62  ;;  %2353 = vmatprep.subr.bf16.mxu0 %v3104_v63  ;;  %v3615_v62 = vld [vmem:[#allocation29_spill] sm:$0xff]  ;;  %v3616_v63 = vld [vmem:[#allocation30_spill] sm:$0xff] }
  0xe8   :  { %2385 = vmatprep.subr.bf16.mxu1 %v3107_v53  ;;  %v3617_v53 = vld [vmem:[#allocation31_spill] sm:$0xff] }
  0xea   :  { %2355 = vmatpush3.bf16.msra.mxu0 %v3110_v30  ;;  %v3581_v30 = vld [vmem:[#allocation62_spill] sm:$0xff] }
  0xeb   :  { %2387 = vmatpush3.bf16.msra.mxu1 %v3114_v50  ;;  %2389 = vmatprep.subr.bf16.mxu0 %v3116_v51  ;;  %v3618_v50 = vld [vmem:[#allocation32_spill] sm:$0xff]  ;;  %v3619_v51 = vld [vmem:[#allocation33_spill] sm:$0xff] }
  0xec   :  { %2421 = vmatprep.subr.bf16.mxu1 %v3119_v6  ;;  %v3620_v6 = vld [vmem:[#allocation34_spill] sm:$0xff] }
  0xed   :  { %972 = vmatmul.mubr.f32.vlgmr.msra.gmra.mrb[8].mxu0 %v2906_v9  ;;  %v3591_v9 = vld [vmem:[#allocation97_spill] sm:$0xff] }
  0xee   :  { %1042 = vmatmul.mubr.f32.vlgmr.msra.gmra.mrb[8].mxu1 %v2908_v10  ;;  %2391 = vmatpush3.bf16.msra.mxu0 %v3126_v34  ;;  %v3592_v10 = vld [vmem:[#allocation98_spill] sm:$0xff]  ;;  %v3621_v34 = vld [vmem:[#allocation35_spill] sm:$0xff] }
  0xef   :  { %2423 = vmatpush3.bf16.msra.mxu1 %v3130_v38  ;;  %2393 = vmatprep.subr.bf16.mxu0 %v3132_v22  ;;  %v3622_v38 = vld [vmem:[#allocation36_spill] sm:$0xff]  ;;  %v3623_v22 = vld [vmem:[#allocation37_spill] sm:$0xff] }
  0xf0   :  { %2425 = vmatprep.subr.bf16.mxu1 %v3135_v17  ;;  %1111 = vmatprep.mubr.f32.mxu0 %v2950_v49  ;;  %v3590_v17 = vld [vmem:[#allocation96_spill] sm:$0xff]  ;;  %v3593_v49 = vld [vmem:[#allocation99_spill] sm:$0xff] }
  0xf1   :  { %1181 = vmatprep.mubr.f32.mxu1 %v3581_v30  ;;  %v3643_v30 = vld [vmem:[#allocation53_spill] sm:$0xff] }
  0xf2   :  { %2395 = vmatpush3.bf16.msra.mxu0 %v3582_v43  ;;  %v3644_v43 = vld [vmem:[#allocation54_spill] sm:$0xff] }
  0xf3   :  { %2427 = vmatpush3.bf16.msra.mxu1 %v3583_v56  ;;  %2397 = vmatprep.subr.bf16.mxu0 %v3584_v5  ;;  %v3645_v56 = vld [vmem:[#allocation55_spill] sm:$0xff]  ;;  %v3646_v5 = vld [vmem:[#allocation56_spill] sm:$0xff] }
  0xf4   :  { %2429 = vmatprep.subr.bf16.mxu1 %v3585_v23  ;;  %v3647_v23 = vld [vmem:[#allocation57_spill] sm:$0xff] }
  0xf6   :  { %2399 = vmatpush3.bf16.msra.mxu0 %v3586_v24  ;;  %v3648_v24 = vld [vmem:[#allocation58_spill] sm:$0xff] }
  0xf7   :  { %2431 = vmatpush3.bf16.msra.mxu1 %v3587_v27  ;;  %2401 = vmatprep.subr.bf16.mxu0 %v3588_v44  ;;  %v3649_v27 = vld [vmem:[#allocation59_spill] sm:$0xff]  ;;  %v3650_v44 = vld [vmem:[#allocation60_spill] sm:$0xff] }
  0xf8   :  { %2433 = vmatprep.subr.bf16.mxu1 %v3589_v60  ;;  %v3651_v60 = vld [vmem:[#allocation61_spill] sm:$0xff] }
  0xfa   :  { %2403 = vmatpush3.bf16.msra.mxu0 %v3590_v17  ;;  %v3652_v17 = vld [vmem:[#allocation63_spill] sm:$0xff] }
  0xfb   :  { %2435 = vmatpush3.bf16.msra.mxu1 %v3591_v9  ;;  %2405 = vmatprep.subr.bf16.mxu0 %v3592_v10  ;;  %v3653_v9 = vld [vmem:[#allocation64_spill] sm:$0xff]  ;;  %v3654_v10 = vld [vmem:[#allocation65_spill] sm:$0xff] }
  0xfc   :  { %2437 = vmatprep.subr.bf16.mxu1 %v3593_v49  ;;  %v3655_v49 = vld [vmem:[#allocation66_spill] sm:$0xff] }
  0xfe   :  { %2407 = vmatpush3.bf16.msra.mxu0 %v3594_v46  ;;  %v3656_v46 = vld [vmem:[#allocation67_spill] sm:$0xff] }
  0xff   :  { %2439 = vmatpush3.bf16.msra.mxu1 %v3595_v61  ;;  %2409 = vmatprep.subr.bf16.mxu0 %v3188_v21  ;;  %v3626_v21 = vld [vmem:[#allocation40_spill] sm:$0xff] }
 0x100   :  { %2441 = vmatprep.subr.bf16.mxu1 %v3596_v47  ;;  %v3657_v61 = vld [vmem:[#allocation68_spill] sm:$0xff] }
 0x102   :  { %2411 = vmatpush3.bf16.msra.mxu0 %v3194_v29  ;;  %v3624_v29 = vld [vmem:[#allocation38_spill] sm:$0xff] }
 0x103   :  { %2443 = vmatpush3.bf16.msra.mxu1 %v3198_v39  ;;  %2413 = vmatprep.subr.bf16.mxu0 %v3200_v37  ;;  %v3628_v39 = vld [vmem:[#allocation42_spill] sm:$0xff]  ;;  %v3629_v37 = vld [vmem:[#allocation43_spill] sm:$0xff] }
 0x104   :  { %2445 = vmatprep.subr.bf16.mxu1 %v3203_v52  ;;  %v3632_v52 = vld [vmem:[#allocation46_spill] sm:$0xff] }
 0x106   :  { %2415 = vmatpush3.bf16.msra.mxu0 %v3206_v58  ;;  %v3625_v58 = vld [vmem:[#allocation39_spill] sm:$0xff] }
 0x107   :  { %2447 = vmatpush3.bf16.msra.mxu1 %v3210_v8  ;;  %2417 = vmatprep.subr.bf16.mxu0 %v3212_v26  ;;  %v3635_v8 = vld [vmem:[#allocation84_spill] sm:$0xff]  ;;  %v3636_v26 = vld [vmem:[#allocation49_spill] sm:$0xff] }
 0x108   :  { %2449 = vmatprep.subr.bf16.mxu1 %v3215_v20  ;;  %v3639_v20 = vld [vmem:[#allocation51_spill] sm:$0xff] }
 0x10a   :  { %2419 = vmatpush3.bf16.msra.mxu0 %v3218_v12  ;;  %v3641_v12 = vld [vmem:[#allocation86_spill] sm:$0xff] }
 0x10b   :  { %2451 = vmatpush3.bf16.msra.mxu1 %v3222_v54  ;;  %2453 = vmatprep.subr.bf16.mxu0 %v3597_v59  ;;  %v3642_v54 = vld [vmem:[#allocation88_spill] sm:$0xff]  ;;  %v3658_v59 = vld [vmem:[#allocation69_spill] sm:$0xff] }
 0x10c   :  { %2485 = vmatprep.subr.bf16.mxu1 %v3598_v40 }
 0x10d   :  { %1112 = vmatmul.mubr.f32.vlgmr.msra.gmra.mrb[10].mxu0 %v3599_v1 }
 0x10e   :  { %2455 = vmatpush3.bf16.msra.mxu0 %v3600_v33  ;;  %1182 = vmatmul.mubr.f32.vlgmr.msra.gmra.mrb[10].mxu1 %v3601_v28 }
 0x10f   :  { %2487 = vmatpush3.bf16.msra.mxu1 %v3602_v41  ;;  %2457 = vmatprep.subr.bf16.mxu0 %v3603_v13  ;;  %v3659_v41 = vld [vmem:[#allocation70_spill] sm:$0xff] }
 0x110   :  { %2489 = vmatprep.subr.bf16.mxu1 %v3604_v15  ;;  %1261 = vmatprep.mubr.f32.mxu0 %v3605_v45  ;;  %v3660_v15 = vld [vmem:[#allocation71_spill] sm:$0xff]  ;;  %v3661_v45 = vld [vmem:[#allocation72_spill] sm:$0xff] }
 0x111   :  { %1331 = vmatprep.mubr.f32.mxu1 %v3606_v55  ;;  %v3662_v55 = vld [vmem:[#allocation73_spill] sm:$0xff] }
 0x112   :  { %2459 = vmatpush3.bf16.msra.mxu0 %v3607_v11 }
 0x113   :  { %2491 = vmatpush3.bf16.msra.mxu1 %v3608_v42  ;;  %2461 = vmatprep.subr.bf16.mxu0 %v3609_v35  ;;  %v3663_v42 = vld [vmem:[#allocation74_spill] sm:$0xff]  ;;  %v3664_v35 = vld [vmem:[#allocation75_spill] sm:$0xff] }
 0x114   :  { %2493 = vmatprep.subr.bf16.mxu1 %v3610_v36  ;;  %v3665_v36 = vld [vmem:[#allocation76_spill] sm:$0xff] }
 0x116   :  { %2463 = vmatpush3.bf16.msra.mxu0 %v3611_v48  ;;  %v3666_v48 = vld [vmem:[#allocation77_spill] sm:$0xff] }
 0x117   :  { %2495 = vmatpush3.bf16.msra.mxu1 %v3612_v14  ;;  %2465 = vmatprep.subr.bf16.mxu0 %v3613_v19  ;;  %v3667_v14 = vld [vmem:[#allocation78_spill] sm:$0xff]  ;;  %v3668_v19 = vld [vmem:[#allocation79_spill] sm:$0xff] }
 0x118   :  { %2497 = vmatprep.subr.bf16.mxu1 %v3614_v31 }
 0x11a   :  { %2467 = vmatpush3.bf16.msra.mxu0 %v3615_v62 }
 0x11b   :  { %2499 = vmatpush3.bf16.msra.mxu1 %v3616_v63  ;;  %2469 = vmatprep.subr.bf16.mxu0 %v3617_v53 }
 0x11c   :  { %2501 = vmatprep.subr.bf16.mxu1 %v3618_v50 }
 0x11e   :  { %2471 = vmatpush3.bf16.msra.mxu0 %v3619_v51 }
 0x11f   :  { %2503 = vmatpush3.bf16.msra.mxu1 %v3620_v6  ;;  %2473 = vmatprep.subr.bf16.mxu0 %v3621_v34 }
 0x120   :  { %2505 = vmatprep.subr.bf16.mxu1 %v3622_v38 }
 0x122   :  { %2475 = vmatpush3.bf16.msra.mxu0 %v3623_v22 }
 0x123   :  { %2507 = vmatpush3.bf16.msra.mxu1 %v3624_v29  ;;  %2477 = vmatprep.subr.bf16.mxu0 %v3625_v58 }
 0x124   :  { %2509 = vmatprep.subr.bf16.mxu1 %v3626_v21 }
 0x126   :  { %2479 = vmatpush3.bf16.msra.mxu0 %v3627_v18 }
 0x127   :  { %2511 = vmatpush3.bf16.msra.mxu1 %v3628_v39  ;;  %2481 = vmatprep.subr.bf16.mxu0 %v3629_v37 }
 0x128   :  { %2513 = vmatprep.subr.bf16.mxu1 %v3630_v7 }
 0x12a   :  { %2483 = vmatpush3.bf16.msra.mxu0 %v3631_v32 }
 0x12b   :  { %2515 = vmatpush3.bf16.msra.mxu1 %v3632_v52  ;;  %2517 = vmatprep.subr.bf16.mxu0 %v3633_v25 }
 0x12c   :  { %2549 = vmatprep.subr.bf16.mxu1 %v3634_v2 }
 0x12d   :  { %1262 = vmatmul.mubr.f32.vlgmr.msra.gmra.mrb[12].mxu0 %v3635_v8  ;;  %v1506_v8 = vld [vmem:[%s3402_s4] ss:$0 sm:$0xff] }
 0x12e   :  { %2519 = vmatpush3.bf16.msra.mxu0 %v3636_v26  ;;  %1332 = vmatmul.mubr.f32.vlgmr.msra.gmra.mrb[12].mxu1 %v3637_v4 }
 0x12f   :  { %2551 = vmatpush3.bf16.msra.mxu1 %v3638_v0  ;;  %2521 = vmatprep.subr.bf16.mxu0 %v3639_v20 }
 0x130   :  { %2553 = vmatprep.subr.bf16.mxu1 %v3640_v3  ;;  %1401 = vmatprep.mubr.f32.mxu0 %v3641_v12 }
 0x131   :  { %1471 = vmatprep.mubr.f32.mxu1 %v3642_v54 }
 0x132   :  { %2523 = vmatpush3.bf16.msra.mxu0 %v3643_v30 }
 0x133   :  { %2555 = vmatpush3.bf16.msra.mxu1 %v3644_v43  ;;  %2525 = vmatprep.subr.bf16.mxu0 %v3645_v56 }
 0x134   :  { %2557 = vmatprep.subr.bf16.mxu1 %v3646_v5 }
 0x136   :  { %2527 = vmatpush3.bf16.msra.mxu0 %v3647_v23 }
 0x137   :  { %2559 = vmatpush3.bf16.msra.mxu1 %v3648_v24  ;;  %2529 = vmatprep.subr.bf16.mxu0 %v3649_v27 }
 0x138   :  { %2561 = vmatprep.subr.bf16.mxu1 %v3650_v44 }
 0x13a   :  { %2531 = vmatpush3.bf16.msra.mxu0 %v3651_v60 }
 0x13b   :  { %2563 = vmatpush3.bf16.msra.mxu1 %v3652_v17  ;;  %2533 = vmatprep.subr.bf16.mxu0 %v3653_v9 }
 0x13c   :  { %2565 = vmatprep.subr.bf16.mxu1 %v3654_v10 }
 0x13e   :  { %2535 = vmatpush3.bf16.msra.mxu0 %v3655_v49 }
 0x13f   :  { %2567 = vmatpush3.bf16.msra.mxu1 %v3656_v46  ;;  %2537 = vmatprep.subr.bf16.mxu0 %v3657_v61 }
 0x140   :  { %v1540_v47 = vpop.f32.mrb[0].mxu0  ;;  %2569 = vmatprep.subr.bf16.mxu1 %v3658_v59 }
 0x141   :  { %v1575_v40 = vpop.f32.mrb[0].mxu1  ;;  %v1541_v1 = vpop.f32.mrb[1].mxu0 }
 0x142   :  { %v1542_v33 = vadd.f32 %v1541_v1, %v1540_v47  ;;  %v1576_v28 = vpop.f32.mrb[1].mxu1  ;;  %2539 = vmatpush3.bf16.msra.mxu0 %v3659_v41 }
 0x143   :  { %v1577_v13 = vadd.f32 %v1576_v28, %v1575_v40  ;;  %2571 = vmatpush3.bf16.msra.mxu1 %v3660_v15  ;;  %2541 = vmatprep.subr.bf16.mxu0 %v3661_v45 }
 0x144   :  { %2573 = vmatprep.subr.bf16.mxu1 %v3662_v55  ;;  %v1507_v55 = vld [vmem:[%s3403_s5] ss:$0 sm:$0xff] }
 0x145   :  { %v484_v11 = vadd.f32 %v1577_v13, %v1542_v33 }
 0x146   :  { %2543 = vmatpush3.bf16.msra.mxu0 %v3663_v42 }
 0x147   :  { %2575 = vmatpush3.bf16.msra.mxu1 %v3664_v35  ;;  %2545 = vmatprep.subr.bf16.mxu0 %v3665_v36 }
 0x148   :  { %2577 = vmatprep.subr.bf16.mxu1 %v3666_v48 }
 0x14a   :  { %2547 = vmatpush3.bf16.msra.mxu0 %v3667_v14 }
 0x14b   :  { %2579 = vmatpush3.bf16.msra.mxu1 %v3668_v19 }
 0x14d   :  { %1402 = vmatmul.mubr.f32.vlgmr.msra.gmra.mrb[14].mxu0 %v3226_v16 }
 0x14e   :  { %1472 = vmatmul.mubr.f32.vlgmr.msra.gmra.mrb[14].mxu1 %v3230_v57 }
 0x160   :  { %v1610_v31 = vpop.f32.mrb[2].mxu0 }
 0x161   :  { %v1611_v62 = vpop.f32.mrb[3].mxu0  ;;  %v1645_v63 = vpop.f32.mrb[2].mxu1 }
 0x162   :  { %v1612_v53 = vadd.f32 %v1611_v62, %v1610_v31  ;;  %v1646_v50 = vpop.f32.mrb[3].mxu1 }
 0x163   :  { %v1647_v51 = vadd.f32 %v1646_v50, %v1645_v63 }
 0x164   :  { %v554_v6 = vadd.f32 %v1612_v53, %v484_v11 }
 0x166   :  { %v624_v34 = vadd.f32 %v1647_v51, %v554_v6 }
 0x180   :  { %v1680_v38 = vpop.f32.mrb[4].mxu0 }
 0x181   :  { %v1715_v22 = vpop.f32.mrb[4].mxu1  ;;  %v1681_v29 = vpop.f32.mrb[5].mxu0 }
 0x182   :  { %v1682_v58 = vadd.f32 %v1681_v29, %v1680_v38  ;;  %v1716_v21 = vpop.f32.mrb[5].mxu1 }
 0x183   :  { %v1717_v18 = vadd.f32 %v1716_v21, %v1715_v22 }
 0x185   :  { %v764_v39 = vadd.f32 %v1717_v18, %v1682_v58 }
 0x1a0   :  { %v1750_v37 = vpop.f32.mrb[6].mxu0 }
 0x1a1   :  { %v1751_v7 = vpop.f32.mrb[7].mxu0  ;;  %v1785_v16 = vpop.f32.mrb[6].mxu1 }
 0x1a2   :  { %v1752_v32 = vadd.f32 %v1751_v7, %v1750_v37  ;;  %v1786_v57 = vpop.f32.mrb[7].mxu1 }
 0x1a3   :  { %v1787_v52 = vadd.f32 %v1786_v57, %v1785_v16 }
 0x1a4   :  { %v834_v25 = vadd.f32 %v1752_v32, %v764_v39 }
 0x1a6   :  { %v904_v2 = vadd.f32 %v1787_v52, %v834_v25 }
 0x1a8   :  { %v1187_v26 = vsub.f32 %v624_v34, %v904_v2 }
 0x1aa   :  { %v1195_v4 = vadd.f32 %v1506_v8, %v1187_v26 }
 0x1ac   :  { %1196 = vst [vmem:[#allocation10] sm:$0xff] %v1195_v4 }
 0x1c0   :  { %v1820_v0 = vpop.f32.mrb[8].mxu0 }
 0x1c1   :  { %v1855_v20 = vpop.f32.mrb[8].mxu1  ;;  %v1821_v3 = vpop.f32.mrb[9].mxu0 }
 0x1c2   :  { %v1822_v12 = vadd.f32 %v1821_v3, %v1820_v0  ;;  %v1856_v54 = vpop.f32.mrb[9].mxu1 }
 0x1c3   :  { %v1857_v30 = vadd.f32 %v1856_v54, %v1855_v20 }
 0x1c5   :  { %v1044_v43 = vadd.f32 %v1857_v30, %v1822_v12 }
 0x1e0   :  { %v1890_v56 = vpop.f32.mrb[10].mxu0 }
 0x1e1   :  { %v1891_v5 = vpop.f32.mrb[11].mxu0  ;;  %v1925_v23 = vpop.f32.mrb[10].mxu1 }
 0x1e2   :  { %v1892_v24 = vadd.f32 %v1891_v5, %v1890_v56  ;;  %v1926_v27 = vpop.f32.mrb[11].mxu1 }
 0x1e3   :  { %v1927_v44 = vadd.f32 %v1926_v27, %v1925_v23 }
 0x1e4   :  { %v1114_v60 = vadd.f32 %v1892_v24, %v1044_v43 }
 0x1e6   :  { %v1184_v17 = vadd.f32 %v1927_v44, %v1114_v60 }
 0x200   :  { %v1960_v9 = vpop.f32.mrb[12].mxu0 }
 0x201   :  { %v1961_v10 = vpop.f32.mrb[13].mxu0  ;;  %v1995_v49 = vpop.f32.mrb[12].mxu1 }
 0x202   :  { %v1962_v46 = vadd.f32 %v1961_v10, %v1960_v9  ;;  %v1996_v61 = vpop.f32.mrb[13].mxu1 }
 0x203   :  { %v1997_v47 = vadd.f32 %v1996_v61, %v1995_v49 }
 0x204   :  { %v1264_v59 = vadd.f32 %v1962_v46, %v1184_v17 }
 0x206   :  { %v1334_v40 = vadd.f32 %v1997_v47, %v1264_v59 }
 0x220   :  { %v2030_v1 = vpop.f32.mrb[14].mxu0 }
 0x221   :  { %v2031_v33 = vpop.f32.mrb[15].mxu0  ;;  %v2065_v28 = vpop.f32.mrb[14].mxu1 }
 0x222   :  { %v2032_v41 = vadd.f32 %v2031_v33, %v2030_v1  ;;  %v2066_v13 = vpop.f32.mrb[15].mxu1 }
 0x223   :  { %v2067_v15 = vadd.f32 %v2066_v13, %v2065_v28 }
 0x224   :  { %v1404_v45 = vadd.f32 %v2032_v41, %v1334_v40 }
 0x226   :  { %v1474_v11 = vadd.f32 %v2067_v15, %v1404_v45 }
 0x228   :  { %v1484_v42 = vadd.f32 %v1507_v55, %v1474_v11 }
 0x22a   :  { %1486 = vst [vmem:[#allocation10 + $0x8] sm:$0xff] %v1484_v42 }
 0x22b   :  { %2686 = shalt.err (!%p2683_p8)
}
 0x22c   :  { %s2687_s27 = scalar_lea.hbm %s3404_s6, 256 }
 0x22d   :  { %p2688_p9 = scmp.ne.s32.totalorder %s3404_s6, %s2687_s27  ;;  %p2691_p10 = scmp.lt.u32.totalorder %s2687_s27, %s3404_s6 }
 0x22f   :  { %p2693_p11 = pnand %p2691_p10, %p2688_p9 }
 0x231   :  { %2696 = shalt.err (!%p2693_p11)
}
 0x232   :  { %1498 = dma.vmem_to_hbm [thread:$0]  %s1493_s22, 256, %s3404_s6, [#allocation4], %s2708_s0, %s2708_s0, %s2709_s24  }
 0x233   :  { %2703 = dma.done.wait [#allocation4], 256  }
 0x234   :  { %2704 = vsyncadd [#allocation4], 4294967040 }
 0x235   :  { %1502 = vsyncpa [#allocation3], 1 }
 0x236   :  { %1503 = vsyncpa [#allocation6], 1 }
 0x237   :  { %1504 = vsyncpa [#allocation9], 1 }
 0x238   :  { %1505 = vsyncpa [#allocation4], 1 }

</bundles_post_ra>
